<compile_context>
chip_gen: v7x
topology: tpu7x:2x2x1
jax: 0.10.0
libtpu: 0.0.40
codegen_flags: <defaults>
</compile_context>

<pallas_src>
import functools

import jax
import jax.numpy as jnp
from jax.experimental import pallas as pl
from jax.experimental.pallas import tpu as pltpu

NEG_SLOPE = 0.1  # nn.LeakyReLU(negative_slope=0.1)


def _leaky_relu(x):
    return jnp.where(x > 0, x, NEG_SLOPE * x)


def conv_block_kernel(x_ref, w1_ref, b1_ref, w2_ref, b2_ref, w3_ref, b3_ref,
                      o_ref, *, seq_len):
    """One grid step: TB sequences, channels-major.

    x_ref:  (Cin, M)   with M = TB * seq_len, lane index m = b*seq_len + s
    wk_ref: (Cout_k, 3*Cin_k)  im2col-folded weights (tap-major, channel-minor)
    bk_ref: (Cout_k, 1)
    o_ref:  (Cout_pad, M)
    """
    x = x_ref[...]                      # (Cin, M) float32
    m = x.shape[1]

    # Per-sequence boundary masks, computed once and reused by all three layers.
    lane = jax.lax.broadcasted_iota(jnp.int32, (1, m), 1)
    first = (lane % seq_len) == 0                 # s == 0       -> no x[t-1]
    last = (lane % seq_len) == (seq_len - 1)      # s == S-1     -> no x[t+1]

    def layer(h, w_ref, b_ref):
        # h: (Cin, M).  Build x[t-1], x[t+1] along the flattened lane axis and
        # zero the entries that would leak across sequence/batch boundaries.
        h_m1 = jnp.where(first, 0.0, jnp.roll(h, 1, axis=1))    # h[:, m-1]
        h_p1 = jnp.where(last, 0.0, jnp.roll(h, -1, axis=1))    # h[:, m+1]
        # im2col: stack taps along the channel (sublane) axis -> one K=3*Cin dot.
        h_cat = jnp.concatenate([h_m1, h, h_p1], axis=0)        # (3*Cin, M)
        return (jnp.dot(w_ref[...], h_cat,
                        preferred_element_type=jnp.float32) + b_ref[...])

    h = _leaky_relu(layer(x, w1_ref, b1_ref))    # c1 + relu1
    h = _leaky_relu(layer(h, w2_ref, b2_ref))    # c2 + relu2
    y = layer(h, w3_ref, b3_ref)                 # c3 (final=True -> no relu3)
    o_ref[...] = y.astype(o_ref.dtype)


def conv_block_forward(inp, params, *, block_rows=512):
    """inp: (..., S, first_features) -> (..., S, dims[-1])."""
    *lead, S, F = inp.shape
    x = inp.reshape((-1, S, F)).astype(jnp.float32)
    B = x.shape[0]
    w1, b1, w2, b2, w3, b3 = params          # wk: (Cout, 3*Cin), bk: (Cout, 1)
    c_out = w3.shape[0]

    # Pad the final Cout up to a sublane multiple (8): dense stores, no skinny
    # (1, K) matmul.  Extra rows are zero weights/bias -> sliced off below.
    c_pad = -(-c_out // 8) * 8
    if c_pad != c_out:
        w3 = jnp.pad(w3, ((0, c_pad - c_out), (0, 0)))
        b3 = jnp.pad(b3, ((0, c_pad - c_out), (0, 0)))

    # Batch tile: pack TB sequences per grid step so the lane dim TB*S is a
    # multiple of 128; fall back to a single full-extent block for tiny batches
    # (full-extent blocks are exempt from the (8,128) divisibility rule).
    tb = max(1, block_rows // S)
    if tb < B:
        while (tb * S) % 128 != 0 and tb < B:
            tb += 1
    if tb >= B:
        tb = B
    Bp = -(-B // tb) * tb
    if Bp != B:
        x = jnp.pad(x, ((0, Bp - B), (0, 0), (0, 0)))

    # Channels-major, batch-major/seq-minor flattened lane axis.
    x_t = x.transpose(2, 0, 1).reshape(F, Bp * S)        # (F, Bp*S)

    m_blk = tb * S
    grid = (Bp // tb,)
    kernel = functools.partial(conv_block_kernel, seq_len=S)

    out_t = pl.pallas_call(
        kernel,
        out_shape=jax.ShapeDtypeStruct((c_pad, Bp * S), jnp.float32),
        grid_spec=pltpu.PrefetchScalarGridSpec(
            num_scalar_prefetch=0,
            grid=grid,
            in_specs=[
                pl.BlockSpec((F, m_blk), lambda i: (0, i)),
                pl.BlockSpec(w1.shape, lambda i: (0, 0)),
                pl.BlockSpec(b1.shape, lambda i: (0, 0)),
                pl.BlockSpec(w2.shape, lambda i: (0, 0)),
                pl.BlockSpec(b2.shape, lambda i: (0, 0)),
                pl.BlockSpec(w3.shape, lambda i: (0, 0)),
                pl.BlockSpec(b3.shape, lambda i: (0, 0)),
            ],
            out_specs=pl.BlockSpec((c_pad, m_blk), lambda i: (0, i)),
        ),
        compiler_params=pltpu.CompilerParams(
            dimension_semantics=("parallel",)),   # v7x: shard batch over 2 TCs
    )(x_t, w1, b1, w2, b2, w3, b3)

    out = out_t[:c_out].reshape(c_out, Bp, S).transpose(1, 2, 0)[:B]
    return out.reshape(tuple(lead) + (S, c_out))


def reference_forward(inp, torch_params):
    """Pure-JAX reference using lax.conv (mirrors the PyTorch NCL convs)."""
    *lead, S, F = inp.shape
    x = inp.reshape((-1, S, F)).astype(jnp.float32).transpose(0, 2, 1)  # (B, Cin, S)

    def conv(x, w, b):
        y = jax.lax.conv_general_dilated(
            x, w, window_strides=(1,), padding="SAME",
            dimension_numbers=("NCH", "OIH", "NCH"))
        return y + b[None, :, None]

    (w1, b1), (w2, b2), (w3, b3) = torch_params
    h = _leaky_relu(conv(x, w1, b1))
    h = _leaky_relu(conv(h, w2, b2))
    y = conv(h, w3, b3)
    y = y.transpose(0, 2, 1)
    return y.reshape(tuple(lead) + (S, w3.shape[0]))


def init_params(key, first_features=32, dims=(32, 32, 1)):
    """Deterministic params.  Torch conv weight layout: (Cout, Cin, K=3)."""
    chans = [first_features] + list(dims)
    torch_params = []
    for i in range(3):
        key, kw, kb = jax.random.split(key, 3)
        cin, cout = chans[i], chans[i + 1]
        fan_in = cin * 3
        bound = 1.0 / (fan_in ** 0.5)
        w = jax.random.uniform(kw, (cout, cin, 3), jnp.float32, -bound, bound)
        b = jax.random.uniform(kb, (cout,), jnp.float32, -bound, bound)
        torch_params.append((w, b))

    # Kernel layout (im2col-folded, channels-major):
    #   w: (Cout, Cin, K) -> (Cout, K, Cin) -> (Cout, 3*Cin)   [tap-major]
    #   b: (Cout,) -> (Cout, 1)
    kernel_params = []
    for w, b in torch_params:
        cout, cin, k = w.shape
        kernel_params.append(jnp.transpose(w, (0, 2, 1)).reshape(cout, k * cin))
        kernel_params.append(b.reshape(-1, 1))
    return torch_params, tuple(kernel_params)


if __name__ == "__main__":
    key = jax.random.PRNGKey(0)
    key, kx = jax.random.split(key)

    FIRST_FEATURES = 32
    DIMS = (32, 32, 1)
    LEAD = (2, 50)          # -> flattened batch B = 100 (exercises tiling + pad)
    S = 8

    # Input shape (..., S, first_features) — here (2, 50, 8, 32).
    x = jax.random.normal(kx, LEAD + (S, FIRST_FEATURES), jnp.float32)

    torch_params, kernel_params = init_params(key, FIRST_FEATURES, DIMS)

    out = conv_block_forward(x, kernel_params)
    out = jax.block_until_ready(out)

    ref = reference_forward(x, torch_params)
    assert out.shape == LEAD + (S, DIMS[-1]), out.shape
    assert jnp.allclose(out, ref, atol=1e-4, rtol=1e-4), (
        float(jnp.max(jnp.abs(out - ref))))

    print("KERNEL_OK")
</pallas_src>

<mosaic_0001>
module attributes {stable_mosaic.version = 11 : i64} {
  func.func @conv_block_kernel(%arg0: i32, %arg1: memref<32x512xf32, #tpu.memory_space<vmem>>, %arg2: memref<32x96xf32, #tpu.memory_space<vmem>>, %arg3: memref<32x1xf32, #tpu.memory_space<vmem>>, %arg4: memref<32x96xf32, #tpu.memory_space<vmem>>, %arg5: memref<32x1xf32, #tpu.memory_space<vmem>>, %arg6: memref<8x96xf32, #tpu.memory_space<vmem>>, %arg7: memref<8x1xf32, #tpu.memory_space<vmem>>, %arg8: memref<8x512xf32, #tpu.memory_space<vmem>>) attributes {dimension_semantics = [#tpu.dimension_semantics<parallel>], iteration_bounds = array<i64: 2>, scalar_prefetch = 0 : i64, scratch_operands = 0 : i64, tpu.core_type = #tpu.core_type<tc>, window_params = [{transform_indices = @transform_0, window_bounds = array<i64: 32, 512>}, {pipeline_mode = #tpu.pipeline_mode<synchronous>, transform_indices = @transform_1, window_bounds = array<i64: 32, 96>}, {pipeline_mode = #tpu.pipeline_mode<synchronous>, transform_indices = @transform_2, window_bounds = array<i64: 32, 1>}, {pipeline_mode = #tpu.pipeline_mode<synchronous>, transform_indices = @transform_3, window_bounds = array<i64: 32, 96>}, {pipeline_mode = #tpu.pipeline_mode<synchronous>, transform_indices = @transform_4, window_bounds = array<i64: 32, 1>}, {pipeline_mode = #tpu.pipeline_mode<synchronous>, transform_indices = @transform_5, window_bounds = array<i64: 8, 96>}, {pipeline_mode = #tpu.pipeline_mode<synchronous>, transform_indices = @transform_6, window_bounds = array<i64: 8, 1>}, {transform_indices = @transform_7, window_bounds = array<i64: 8, 512>}]} {
    %c0 = arith.constant 0 : index
    %c0_0 = arith.constant 0 : index
    %0 = vector.load %arg1[%c0, %c0_0] : memref<32x512xf32, #tpu.memory_space<vmem>>, vector<32x512xf32>
    %1 = tpu.iota {dimensions = array<i32: 1>} : vector<1x512xi32>
    %c8_i32 = arith.constant 8 : i32
    %c0_i32 = arith.constant 0 : i32
    %2 = arith.cmpi eq, %c8_i32, %c0_i32 : i32
    %c1_i32 = arith.constant 1 : i32
    %3 = arith.select %2, %c1_i32, %c8_i32 : i32
    %4 = vector.broadcast %3 : i32 to vector<1x512xi32>
    %5 = arith.remsi %1, %4 : vector<1x512xi32>
    %c0_i32_1 = arith.constant 0 : i32
    %6 = vector.broadcast %c0_i32_1 : i32 to vector<1x512xi32>
    %7 = arith.cmpi ne, %5, %6 : vector<1x512xi32>
    %c0_i32_2 = arith.constant 0 : i32
    %8 = vector.broadcast %c0_i32_2 : i32 to vector<1x512xi32>
    %9 = arith.cmpi slt, %5, %8 : vector<1x512xi32>
    %c0_i32_3 = arith.constant 0 : i32
    %10 = arith.cmpi slt, %3, %c0_i32_3 : i32
    %11 = vector.broadcast %10 : i1 to vector<1x512xi1>
    %12 = vector.broadcast %11 : vector<1x512xi1> to vector<1x512xi1>
    %13 = arith.xori %9, %12 : vector<1x512xi1>
    %14 = arith.andi %13, %7 : vector<1x512xi1>
    %15 = vector.broadcast %3 : i32 to vector<1x512xi32>
    %16 = arith.addi %5, %15 : vector<1x512xi32>
    %17 = arith.select %14, %16, %5 : vector<1x512xi1>, vector<1x512xi32>
    %c0_i32_4 = arith.constant 0 : i32
    %18 = vector.broadcast %c0_i32_4 : i32 to vector<1x512xi32>
    %19 = arith.cmpi eq, %17, %18 : vector<1x512xi32>
    %c8_i32_5 = arith.constant 8 : i32
    %c0_i32_6 = arith.constant 0 : i32
    %20 = arith.cmpi eq, %c8_i32_5, %c0_i32_6 : i32
    %c1_i32_7 = arith.constant 1 : i32
    %21 = arith.select %20, %c1_i32_7, %c8_i32_5 : i32
    %22 = vector.broadcast %21 : i32 to vector<1x512xi32>
    %23 = arith.remsi %1, %22 : vector<1x512xi32>
    %c0_i32_8 = arith.constant 0 : i32
    %24 = vector.broadcast %c0_i32_8 : i32 to vector<1x512xi32>
    %25 = arith.cmpi ne, %23, %24 : vector<1x512xi32>
    %c0_i32_9 = arith.constant 0 : i32
    %26 = vector.broadcast %c0_i32_9 : i32 to vector<1x512xi32>
    %27 = arith.cmpi slt, %23, %26 : vector<1x512xi32>
    %c0_i32_10 = arith.constant 0 : i32
    %28 = arith.cmpi slt, %21, %c0_i32_10 : i32
    %29 = vector.broadcast %28 : i1 to vector<1x512xi1>
    %30 = vector.broadcast %29 : vector<1x512xi1> to vector<1x512xi1>
    %31 = arith.xori %27, %30 : vector<1x512xi1>
    %32 = arith.andi %31, %25 : vector<1x512xi1>
    %33 = vector.broadcast %21 : i32 to vector<1x512xi32>
    %34 = arith.addi %23, %33 : vector<1x512xi32>
    %35 = arith.select %32, %34, %23 : vector<1x512xi1>, vector<1x512xi32>
    %c7_i32 = arith.constant 7 : i32
    %36 = vector.broadcast %c7_i32 : i32 to vector<1x512xi32>
    %37 = arith.cmpi eq, %35, %36 : vector<1x512xi32>
    %38 = vector.extract_strided_slice %0 {offsets = [0, 511], sizes = [32, 1], strides = [1, 1]} : vector<32x512xf32> to vector<32x1xf32>
    %39 = vector.extract_strided_slice %0 {offsets = [0, 0], sizes = [32, 511], strides = [1, 1]} : vector<32x512xf32> to vector<32x511xf32>
    %40 = tpu.concatenate %38, %39 in 1 : vector<32x1xf32>, vector<32x511xf32> -> vector<32x512xf32>
    %cst = arith.constant 0.000000e+00 : f32
    %41 = vector.shape_cast %19 : vector<1x512xi1> to vector<1x512xi1>
    %42 = vector.broadcast %41 : vector<1x512xi1> to vector<32x512xi1>
    %43 = vector.broadcast %cst : f32 to vector<32x512xf32>
    %44 = arith.select %42, %43, %40 : vector<32x512xi1>, vector<32x512xf32>
    %45 = vector.extract_strided_slice %0 {offsets = [0, 1], sizes = [32, 511], strides = [1, 1]} : vector<32x512xf32> to vector<32x511xf32>
    %46 = vector.extract_strided_slice %0 {offsets = [0, 0], sizes = [32, 1], strides = [1, 1]} : vector<32x512xf32> to vector<32x1xf32>
    %47 = tpu.concatenate %45, %46 in 1 : vector<32x511xf32>, vector<32x1xf32> -> vector<32x512xf32>
    %cst_11 = arith.constant 0.000000e+00 : f32
    %48 = vector.shape_cast %37 : vector<1x512xi1> to vector<1x512xi1>
    %49 = vector.broadcast %48 : vector<1x512xi1> to vector<32x512xi1>
    %50 = vector.broadcast %cst_11 : f32 to vector<32x512xf32>
    %51 = arith.select %49, %50, %47 : vector<32x512xi1>, vector<32x512xf32>
    %52 = tpu.concatenate %44, %0, %51 in 0 : vector<32x512xf32>, vector<32x512xf32>, vector<32x512xf32> -> vector<96x512xf32>
    %c0_12 = arith.constant 0 : index
    %c0_13 = arith.constant 0 : index
    %53 = vector.load %arg2[%c0_12, %c0_13] : memref<32x96xf32, #tpu.memory_space<vmem>>, vector<32x96xf32>
    %cst_14 = arith.constant dense<0.000000e+00> : vector<32x512xf32>
    %54 = tpu.matmul %53, %52, %cst_14 {dimension_numbers = #tpu.dot_dimension_numbers<[1], [0], [0], [1], [0, 0, 1, 1], [], []>} : vector<32x96xf32>, vector<96x512xf32>, vector<32x512xf32> -> vector<32x512xf32>
    %c0_15 = arith.constant 0 : index
    %c0_16 = arith.constant 0 : index
    %55 = vector.load %arg3[%c0_15, %c0_16] : memref<32x1xf32, #tpu.memory_space<vmem>>, vector<32x1xf32>
    %56 = vector.broadcast %55 : vector<32x1xf32> to vector<32x512xf32>
    %57 = arith.addf %54, %56 : vector<32x512xf32>
    %cst_17 = arith.constant 0.000000e+00 : f32
    %58 = vector.broadcast %cst_17 : f32 to vector<32x512xf32>
    %59 = arith.cmpf ogt, %57, %58 : vector<32x512xf32>
    %cst_18 = arith.constant 1.000000e-01 : f32
    %60 = vector.broadcast %cst_18 : f32 to vector<32x512xf32>
    %61 = arith.mulf %60, %57 : vector<32x512xf32>
    %62 = arith.select %59, %57, %61 : vector<32x512xi1>, vector<32x512xf32>
    %63 = vector.extract_strided_slice %62 {offsets = [0, 511], sizes = [32, 1], strides = [1, 1]} : vector<32x512xf32> to vector<32x1xf32>
    %64 = vector.extract_strided_slice %62 {offsets = [0, 0], sizes = [32, 511], strides = [1, 1]} : vector<32x512xf32> to vector<32x511xf32>
    %65 = tpu.concatenate %63, %64 in 1 : vector<32x1xf32>, vector<32x511xf32> -> vector<32x512xf32>
    %cst_19 = arith.constant 0.000000e+00 : f32
    %66 = vector.shape_cast %19 : vector<1x512xi1> to vector<1x512xi1>
    %67 = vector.broadcast %66 : vector<1x512xi1> to vector<32x512xi1>
    %68 = vector.broadcast %cst_19 : f32 to vector<32x512xf32>
    %69 = arith.select %67, %68, %65 : vector<32x512xi1>, vector<32x512xf32>
    %70 = vector.extract_strided_slice %62 {offsets = [0, 1], sizes = [32, 511], strides = [1, 1]} : vector<32x512xf32> to vector<32x511xf32>
    %71 = vector.extract_strided_slice %62 {offsets = [0, 0], sizes = [32, 1], strides = [1, 1]} : vector<32x512xf32> to vector<32x1xf32>
    %72 = tpu.concatenate %70, %71 in 1 : vector<32x511xf32>, vector<32x1xf32> -> vector<32x512xf32>
    %cst_20 = arith.constant 0.000000e+00 : f32
    %73 = vector.shape_cast %37 : vector<1x512xi1> to vector<1x512xi1>
    %74 = vector.broadcast %73 : vector<1x512xi1> to vector<32x512xi1>
    %75 = vector.broadcast %cst_20 : f32 to vector<32x512xf32>
    %76 = arith.select %74, %75, %72 : vector<32x512xi1>, vector<32x512xf32>
    %77 = tpu.concatenate %69, %62, %76 in 0 : vector<32x512xf32>, vector<32x512xf32>, vector<32x512xf32> -> vector<96x512xf32>
    %c0_21 = arith.constant 0 : index
    %c0_22 = arith.constant 0 : index
    %78 = vector.load %arg4[%c0_21, %c0_22] : memref<32x96xf32, #tpu.memory_space<vmem>>, vector<32x96xf32>
    %cst_23 = arith.constant dense<0.000000e+00> : vector<32x512xf32>
    %79 = tpu.matmul %78, %77, %cst_23 {dimension_numbers = #tpu.dot_dimension_numbers<[1], [0], [0], [1], [0, 0, 1, 1], [], []>} : vector<32x96xf32>, vector<96x512xf32>, vector<32x512xf32> -> vector<32x512xf32>
    %c0_24 = arith.constant 0 : index
    %c0_25 = arith.constant 0 : index
    %80 = vector.load %arg5[%c0_24, %c0_25] : memref<32x1xf32, #tpu.memory_space<vmem>>, vector<32x1xf32>
    %81 = vector.broadcast %80 : vector<32x1xf32> to vector<32x512xf32>
    %82 = arith.addf %79, %81 : vector<32x512xf32>
    %cst_26 = arith.constant 0.000000e+00 : f32
    %83 = vector.broadcast %cst_26 : f32 to vector<32x512xf32>
    %84 = arith.cmpf ogt, %82, %83 : vector<32x512xf32>
    %cst_27 = arith.constant 1.000000e-01 : f32
    %85 = vector.broadcast %cst_27 : f32 to vector<32x512xf32>
    %86 = arith.mulf %85, %82 : vector<32x512xf32>
    %87 = arith.select %84, %82, %86 : vector<32x512xi1>, vector<32x512xf32>
    %88 = vector.extract_strided_slice %87 {offsets = [0, 511], sizes = [32, 1], strides = [1, 1]} : vector<32x512xf32> to vector<32x1xf32>
    %89 = vector.extract_strided_slice %87 {offsets = [0, 0], sizes = [32, 511], strides = [1, 1]} : vector<32x512xf32> to vector<32x511xf32>
    %90 = tpu.concatenate %88, %89 in 1 : vector<32x1xf32>, vector<32x511xf32> -> vector<32x512xf32>
    %cst_28 = arith.constant 0.000000e+00 : f32
    %91 = vector.shape_cast %19 : vector<1x512xi1> to vector<1x512xi1>
    %92 = vector.broadcast %91 : vector<1x512xi1> to vector<32x512xi1>
    %93 = vector.broadcast %cst_28 : f32 to vector<32x512xf32>
    %94 = arith.select %92, %93, %90 : vector<32x512xi1>, vector<32x512xf32>
    %95 = vector.extract_strided_slice %87 {offsets = [0, 1], sizes = [32, 511], strides = [1, 1]} : vector<32x512xf32> to vector<32x511xf32>
    %96 = vector.extract_strided_slice %87 {offsets = [0, 0], sizes = [32, 1], strides = [1, 1]} : vector<32x512xf32> to vector<32x1xf32>
    %97 = tpu.concatenate %95, %96 in 1 : vector<32x511xf32>, vector<32x1xf32> -> vector<32x512xf32>
    %cst_29 = arith.constant 0.000000e+00 : f32
    %98 = vector.shape_cast %37 : vector<1x512xi1> to vector<1x512xi1>
    %99 = vector.broadcast %98 : vector<1x512xi1> to vector<32x512xi1>
    %100 = vector.broadcast %cst_29 : f32 to vector<32x512xf32>
    %101 = arith.select %99, %100, %97 : vector<32x512xi1>, vector<32x512xf32>
    %102 = tpu.concatenate %94, %87, %101 in 0 : vector<32x512xf32>, vector<32x512xf32>, vector<32x512xf32> -> vector<96x512xf32>
    %c0_30 = arith.constant 0 : index
    %c0_31 = arith.constant 0 : index
    %103 = vector.load %arg6[%c0_30, %c0_31] : memref<8x96xf32, #tpu.memory_space<vmem>>, vector<8x96xf32>
    %cst_32 = arith.constant dense<0.000000e+00> : vector<8x512xf32>
    %104 = tpu.matmul %103, %102, %cst_32 {dimension_numbers = #tpu.dot_dimension_numbers<[1], [0], [0], [1], [0, 0, 1, 1], [], []>} : vector<8x96xf32>, vector<96x512xf32>, vector<8x512xf32> -> vector<8x512xf32>
    %c0_33 = arith.constant 0 : index
    %c0_34 = arith.constant 0 : index
    %105 = vector.load %arg7[%c0_33, %c0_34] : memref<8x1xf32, #tpu.memory_space<vmem>>, vector<8x1xf32>
    %106 = vector.broadcast %105 : vector<8x1xf32> to vector<8x512xf32>
    %107 = arith.addf %104, %106 : vector<8x512xf32>
    %c0_35 = arith.constant 0 : index
    %c0_36 = arith.constant 0 : index
    %108 = vector.load %arg8[%c0_35, %c0_36] : memref<8x512xf32, #tpu.memory_space<vmem>>, vector<8x512xf32>
    tpu.vector_store %arg8[%c0_35, %c0_36], %107 {strides = array<i32>} : memref<8x512xf32, #tpu.memory_space<vmem>>, vector<8x512xf32>,
    return
  }
  func.func @transform_0(%arg0: i32) -> (i32, i32) {
    %c0_i32 = arith.constant 0 : i32
    %c0_i32_0 = arith.constant 0 : i32
    return %c0_i32, %arg0 : i32, i32
  }
  func.func @transform_1(%arg0: i32) -> (i32, i32) {
    %c0_i32 = arith.constant 0 : i32
    %c0_i32_0 = arith.constant 0 : i32
    %c0_i32_1 = arith.constant 0 : i32
    return %c0_i32, %c0_i32_0 : i32, i32
  }
  func.func @transform_2(%arg0: i32) -> (i32, i32) {
    %c0_i32 = arith.constant 0 : i32
    %c0_i32_0 = arith.constant 0 : i32
    %c0_i32_1 = arith.constant 0 : i32
    return %c0_i32, %c0_i32_0 : i32, i32
  }
  func.func @transform_3(%arg0: i32) -> (i32, i32) {
    %c0_i32 = arith.constant 0 : i32
    %c0_i32_0 = arith.constant 0 : i32
    %c0_i32_1 = arith.constant 0 : i32
    return %c0_i32, %c0_i32_0 : i32, i32
  }
  func.func @transform_4(%arg0: i32) -> (i32, i32) {
    %c0_i32 = arith.constant 0 : i32
    %c0_i32_0 = arith.constant 0 : i32
    %c0_i32_1 = arith.constant 0 : i32
    return %c0_i32, %c0_i32_0 : i32, i32
  }
  func.func @transform_5(%arg0: i32) -> (i32, i32) {
    %c0_i32 = arith.constant 0 : i32
    %c0_i32_0 = arith.constant 0 : i32
    %c0_i32_1 = arith.constant 0 : i32
    return %c0_i32, %c0_i32_0 : i32, i32
  }
  func.func @transform_6(%arg0: i32) -> (i32, i32) {
    %c0_i32 = arith.constant 0 : i32
    %c0_i32_0 = arith.constant 0 : i32
    %c0_i32_1 = arith.constant 0 : i32
    return %c0_i32, %c0_i32_0 : i32, i32
  }
  func.func @transform_7(%arg0: i32) -> (i32, i32) {
    %c0_i32 = arith.constant 0 : i32
    %c0_i32_0 = arith.constant 0 : i32
    return %c0_i32, %arg0 : i32, i32
  }
}

</mosaic_0001>

<bundles_post_ra>
// kernel: tpu_custom_call.1
= control target key start
LH: loop header
LB: loop body
LE: loop exit
PB: predicated region body
PF: predicated region fallthrough
CT: control target
= control target key end

     0   :  { %12 = vsyncpa [#allocation3], 0  ;;  %s3486_s0 = inlined_call_operand.hbm [shape: f32[32,1024], index: 0, kind: input, shape index: {}]   ;;  %s3487_s1 = inlined_call_operand.vmem [shape: f32[32,96], index: 1, kind: input, shape index: {}]   ;;  %s3488_s2 = inlined_call_operand.vmem [shape: f32[32,1], index: 2, kind: input, shape index: {}]   ;;  %s3489_s3 = inlined_call_operand.vmem [shape: f32[32,96], index: 3, kind: input, shape index: {}]   ;;  %s3490_s4 = inlined_call_operand.vmem [shape: f32[32,1], index: 4, kind: input, shape index: {}]   ;;  %s3491_s5 = inlined_call_operand.vmem [shape: f32[8,96], index: 5, kind: input, shape index: {}]   ;;  %s3492_s6 = inlined_call_operand.vmem [shape: f32[8,1], index: 6, kind: input, shape index: {}]   ;;  %s3493_s7 = inlined_call_operand.hbm [shape: f32[8,1024], index: 7, kind: output, shape index: {}]  }
   0x1   :  { %14 = vsyncpa [#allocation3 + $0x1], 0 }
   0x2   :  { %15 = vsyncpa [#allocation4], 0 }
   0x3   :  { %17 = vsyncpa [#allocation4 + $0x1], 0  ;;  %s2588_s24 = smov 0   ;;  %s2590_s25 = smov 0  }
   0x4   :  { %s2592_s26 = smov 0   ;;  %s2594_s27 = smov 0  }
   0x5 LB: > { %s2609_s28 = sadd.s32 4294967295, %s2537_s27   ;;  %s1720_s29 = sadd.s32 4294967294, %s2537_s27   ;;  %s2537_s27 = sphi %s2594_s27, %s3531_s27   ;;  %s2533_s26 = sphi %s2592_s26, %s3530_s26   ;;  %s2529_s25 = sphi %s2590_s25, %s3529_s25   ;;  %s2525_s24 = sphi %s2588_s24, %s3528_s24  }
   0x6   : > { %s2613_s30 = sadd.s32 1, %s2537_s27   ;;  %s30_s8 = sadd.s32 1, %s2533_s26 }
   0x7   : > { %s27_s9 = ssub.s32 %s2537_s27, %s2613_s30  ;;  %p37_p0 = scmp.ne.s32.totalorder %s2533_s26, %s2529_s25 }
   0x8   : > { %p28_p1 = scmp.eq.s32.totalorder %s27_s9, 0  ;;  %p38_p2 = scmp.eq.s32.totalorder %s2537_s27, 0 }
   0x9   : > { %p43_p3 = scmp.ne.s32.totalorder %s2529_s25, %s2525_s24  ;;  %p44_p4 = scmp.eq.s32.totalorder %s2609_s28, 0 }
   0xa   : > { %s2625_s10 = scalar_select %p28_p1, %s2533_s26, %s30_s8  }
   0xb   : > { %p2627_p5 = por %p38_p2, %p37_p0  ;;  %p2631_p6 = por %p44_p4, %p43_p3 }
   0xc   : > { %p193_p7 = scmp.eq.s32.totalorder %s2609_s28, 1  ;;  %p199_p8 = scmp.eq.s32.totalorder %s1720_s29, 1 }
   0xd   : > { %p2158_p10 = scmp.lt.s32.totalorder %s2537_s27, 2  ;;  %s237_s15 = sand.u32 1, %s2533_s26  }
   0xe   : > { %p2638_p11 = por %p193_p7, %p37_p0  ;;  %p2642_p12 = por %p199_p8, %p43_p3 }
   0xf   : > { %s1944_s16 = sshll.u32 %s2537_s27, 9  ;;  %s1723_s17 = sshll.u32 %s237_s15, 7 }
  0x10   : > { %s3497_s13 = scalar_select %p2638_p11, 1, 0 }
  0x11   : > { %s3498_s14 = scalar_select %p2642_p12, 1, 0 }
  0x12   : > { %s2651_s20 = scalar_lea.hbm %s3486_s0, %s1944_s16  ;;  %s241_s21 = scalar_lea.vmem [#allocation2], %s1723_s17 }
  0x13   : > { %s248_s22 = sshll.u32 %s241_s21, 4  ;;  %p2655_p13 = pnand %p2158_p10, %p2627_p5  ;;  %s2659_s22 = int_to_ptr.vmem [resolvable:$true] %s248_s22 }
  0x14   : > { %s2662_s29 = scalar_lea.sflag [#allocation3], %s237_s15  ;;  %s2441_s8 = scalar_lea.hbm %s2651_s20, 2048 }
  0x15   : > { %p2442_p1 = scmp.ne.s32.totalorder %s2651_s20, %s2441_s8  ;;  %p2443_p2 = pneg %p2655_p13 }
  0x16   : > { %s2446_s16 = scalar_lea.hbm %s3486_s0, 4096  ;;  %p2447_p5 = scmp.lt.u32.totalorder %s2651_s20, %s3486_s0 }
  0x17   : > { %p2444_p3 = pnand %p2443_p2, %p2442_p1  ;;  %p2448_p7 = scmp.lt.u32.totalorder %s2446_s16, %s2441_s8 }
  0x18   : > { %p2450_p10 = scmp.lt.u32.totalorder %s2441_s8, %s2651_s20 }
  0x19   : > { %p2445_p4 = pneg %p2444_p3  ;;  %p2449_p8 = por %p2448_p7, %p2447_p5 }
  0x1b   : > { %p2451_p9 = por %p2450_p10, %p2449_p8 }
  0x1d   : > { %p2452_p0 = pnand %p2451_p9, %p2445_p4 }
  0x1f   : > { %2455 = shalt.err (!%p2452_p0)
}
  0x20   : > { %s2456_s15 = scalar_lea.vmem %s2659_s22, 2048  ;;  %s2539_s19 = smov [#allocation2]  }
  0x21   : > { %p2457_p1 = scmp.ne.s32.totalorder %s2659_s22, %s2456_s15  ;;  %s2461_s21 = sshll.u32 %s2539_s19, 4  ;;  %s2462_s21 = int_to_ptr.vmem [resolvable:$false] %s2461_s21 }
  0x22   : > { %s2463_s9 = scalar_lea.vmem %s2462_s21, 4096  ;;  %p2464_p11 = scmp.lt.s32.totalorder %s2659_s22, %s2462_s21 }
  0x23   : > { %p2459_p3 = pnand %p2457_p1, %p2443_p2  ;;  %p2465_p5 = scmp.lt.s32.totalorder %s2463_s9, %s2456_s15 }
  0x25   : > { %p2460_p12 = pneg %p2459_p3  ;;  %p2466_p7 = por %p2465_p5, %p2464_p11 }
  0x27   : > { %p2467_p8 = pnand %p2466_p7, %p2460_p12 }
  0x29   : > { %2470 = shalt.err (!%p2467_p8)
}
  0x2a   : > { %s2540_s8 = smov 1024   ;;  %s2541_s11 = smov 512  }
  0x2b   : > { %s2542_s16 = smov 32   ;;  %p256_p9 = scmp.lt.s32.totalorder %s2537_s27, 3 }
  0x2c   : > { %2153 = dma.hbm_to_vmem [thread:$0]  (!%p2655_p13), %s2651_s20, 2048, %s2659_s22, %s2662_s29, %s2540_s8, %s2541_s11, %s2542_s16  }
  0x2d   : > { %p3500_p0 = scmp.ge.s32.totalorder %s2537_s27, 1 }
  0x2f   : > { %p257_p2 = pnand %p3500_p0, %p256_p9 }
  0x30   : > { %s2694_s17 = sand.u32 (!%p257_p2), 1, %s2529_s25  }
  0x31   : > { %260 = sbr.rel (%p257_p2) target bundleno = 1199 (0x4af), region = 48  ;;  %s1727_s18 = sshll.u32 (!%p257_p2), %s2694_s17, 7 }
  0x32   : > { %s263_s15 = scalar_lea.sflag (!%p257_p2), [#allocation3], %s2694_s17  ;;  %s266_s19 = scalar_lea.vmem (!%p257_p2), [#allocation2], %s1727_s18 }
  0x38   : > { %2516 = dma.done.wait (%p2631_p6), %s263_s15, 2048  }
  0x39   : > { %2518 = vsyncadd (%p2631_p6), %s263_s15, 4294965248  ;;  %v2702_v0 = vld [vmem:[%s266_s19 + $0x18] sm:$0xff]  ;;  %v2706_v2 = vld [vmem:[%s266_s19 + $0x10] sm:$0xff]  ;;  %s2543_s12 = smov 1   ;;  %s2544_s20 = smov 127   ;;  %v2545_v37 = vmov 0.0   ;;  %v315_v44 = vlaneseq }
  0x3a   : > { %v2704_v1 = vld [vmem:[%s266_s19 + $0x38] sm:$0xff]  ;;  %v2710_v4 = vld [vmem:[%s266_s19 + $0x20] sm:$0xff]  ;;  %v2712_v5 = vld [vmem:[%s266_s19 + $0x28] sm:$0xff]  ;;  %v2244_v30 = vpack.i.bf16 %v2702_v0, %v2706_v2  ;;  %683 = vmatprep.mubr.f32.mxu0 %v2545_v37  ;;  %772 = vmatprep.mubr.f32.mxu1 %v2545_v37  ;;  %v2546_v41 = vmov 0   ;;  %vm428_vm0 = vcmask 7168   ;;  %vm517_vm9 = vcmask 1039360  }
  0x3b   : > { %v2199_v3 = vpack.i.bf16 %v2704_v1, %v2702_v0  ;;  %v2714_v6 = vld [vmem:[%s266_s19 + $0x30] sm:$0xff]  ;;  %v2209_v7 = vpack.i.bf16 %v2710_v4, %v2706_v2  ;;  %v2718_v8 = vld [vmem:[%s266_s19] sm:$0xff]  ;;  %v2720_v9 = vld [vmem:[%s266_s19 + $0x8] sm:$0xff]  ;;  %v1998_v24 = vpack.c.bf16 %v2704_v1, %v2702_v0  ;;  %v2249_v33 = vpack.i.bf16 %v2712_v5, %v2710_v4  ;;  %2280 = vset.pattern.permute.xlu1 %v2546_v41  ;;  %s1728_s23 = sshll.u32 %s2694_s17, 5  ;;  %s1945_s29 = sshll.u32 %s2609_s28, 9 }
  0x3c   : > { %v2204_v10 = vpack.i.bf16 %v2720_v9, %v2718_v8  ;;  %v2214_v11 = vpack.i.bf16 %v2714_v6, %v2712_v5  ;;  %v2728_v12 = vld [vmem:[%s266_s19 + $0x58] sm:$0xff]  ;;  %v2732_v14 = vld [vmem:[%s266_s19 + $0x40] sm:$0xff]  ;;  %v2734_v15 = vld [vmem:[%s266_s19 + $0x48] sm:$0xff]  ;;  %v1966_v23 = vpack.c.bf16 %v2712_v5, %v2720_v9  ;;  %v1968_v26 = vpack.c.bf16 %v2710_v4, %v2718_v8  ;;  %2279 = vset.pattern.permute.xlu0 %v2546_v41  ;;  %s296_s21 = scalar_lea.vmem [#allocation5], %s1728_s23  ;;  %s3442_s16 = scalar_lea.hbm %s3493_s7, %s1945_s29 }
  0x3d   : > { %2200 = vrot.lane.b32.xlu0 %v2199_v3, %s2543_s12  ;;  %2210 = vrot.lane.b32.xlu1 %v2209_v7, %s2543_s12  ;;  %v2730_v13 = vld [vmem:[%s266_s19 + $0x78] sm:$0xff]  ;;  %v2224_v17 = vpack.i.bf16 %v2734_v15, %v2732_v14  ;;  %v2742_v18 = vld [vmem:[%s266_s19 + $0x50] sm:$0xff]  ;;  %v2000_v27 = vpack.c.bf16 %v2714_v6, %v2706_v2  ;;  %v2254_v34 = vpack.i.bf16 %v2704_v1, %v2714_v6  ;;  %v2808_v45 = vand.u32 127, %v315_v44  ;;  %s1650_s9 = sshll.u32 %s296_s21, 4  ;;  %s1636_s28 = scalar_lea.sflag [#allocation4], %s2694_s17  ;;  %s3444_s9 = int_to_ptr.vmem [resolvable:$true] %s1650_s9 }
  0x3e   : > { %v2219_v16 = vpack.i.bf16 %v2730_v13, %v2728_v12  ;;  %v2744_v19 = vld [vmem:[%s266_s19 + $0x60] sm:$0xff]  ;;  %v2746_v20 = vld [vmem:[%s266_s19 + $0x68] sm:$0xff]  ;;  %v2748_v21 = vld [vmem:[%s266_s19 + $0x70] sm:$0xff]  ;;  %v2002_v29 = vpack.c.bf16 %v2730_v13, %v2728_v12  ;;  %v2264_v35 = vpack.i.bf16 %v2728_v12, %v2742_v18  ;;  %s2471_s18 = scalar_lea.vmem %s3444_s9, 512  ;;  %p3525_p11 = scmp.ne.s32.totalorder %s3497_s13, 0 }
  0x3f   : > { %v2229_v22 = vpack.i.bf16 %v2744_v19, %v2742_v18  ;;  %v2234_v25 = vpack.i.bf16 %v2748_v21, %v2746_v20  ;;  %v1970_v28 = vpack.c.bf16 %v2746_v20, %v2734_v15  ;;  %v1972_v31 = vpack.c.bf16 %v2744_v19, %v2732_v14  ;;  %v583_v39 = vld [vmem:[%s3488_s2 + $0x8] sm:$0xff]  ;;  %v582_v40 = vld [vmem:[%s3488_s2] sm:$0xff]  ;;  %v584_v42 = vld [vmem:[%s3488_s2 + $0x10] sm:$0xff]  ;;  %p2472_p6 = scmp.ne.s32.totalorder %s3444_s9, %s2471_s18  ;;  %s2547_s15 = smov [#allocation5]  }
  0x40   : > { %v2004_v32 = vpack.c.bf16 %v2748_v21, %v2742_v18  ;;  %v2269_v36 = vpack.i.bf16 %v2746_v20, %v2744_v19  ;;  %v2274_v38 = vpack.i.bf16 %v2730_v13, %v2748_v21  ;;  %v585_v43 = vld [vmem:[%s3488_s2 + $0x18] sm:$0xff]  ;;  %v2811_v46 = vadd.s32 128, %v2808_v45 }
  0x41   : > { %2205 = vrot.lane.b32.xlu0 %v2204_v10, %s2543_s12  ;;  %2215 = vrot.lane.b32.xlu1 %v2214_v11, %s2543_s12  ;;  %v2814_v47 = vadd.s32 384, %v2808_v45  ;;  %v2817_v48 = vadd.s32 256, %v2808_v45  ;;  %v324_v53 = vand.u32 7, %v2808_v45  ;;  %p2473_p12 = pnand %p2472_p6, %p3525_p11 }
  0x42   : > { %v331_v49 = vand.u32 7, %v2811_v46 }
  0x43   : > { %v345_v51 = vand.u32 7, %v2814_v47  ;;  %v338_v56 = vand.u32 7, %v2817_v48  ;;  %vm1947_vm3 = vcmp.ne.s32.totalorder %v324_v53, 0  ;;  %vm2911_vm12 = vcmp.ne.s32.totalorder %v324_v53, 7  ;;  %p2474_p13 = pneg %p2473_p12 }
  0x44   : > { %vm1946_vm1 = vcmp.ne.s32.totalorder %v331_v49, 0  ;;  %vm2846_vm7 = vmpackc.low %vm1947_vm3, %vm1947_vm3  ;;  %vm2887_vm10 = vcmp.ne.s32.totalorder %v331_v49, 7  ;;  %vm606_vm3 = vcmask 785408  }
  0x45   : > { %2220 = vrot.lane.b32.xlu0 %v2219_v16, %s2543_s12  ;;  %2225 = vrot.lane.b32.xlu1 %v2224_v17, %s2543_s12  ;;  %vm1950_vm2 = vcmp.ne.s32.totalorder %v345_v51, 0  ;;  %vm2829_vm4 = vmpackc.low %vm1946_vm1, %vm1946_vm1  ;;  %vm1951_vm5 = vcmp.ne.s32.totalorder %v338_v56, 0  ;;  %vm2897_vm11 = vcmp.ne.s32.totalorder %v345_v51, 7  ;;  %vm2917_vm13 = vcmp.ne.s32.totalorder %v338_v56, 7 }
  0x46   : > { %vm2837_vm6 = vmpackc.low %vm1950_vm2, %vm1950_vm2 }
  0x47   : > { %vm2851_vm8 = vmpackc.low %vm1951_vm5, %vm1951_vm5 }
  0x48   : > { %vm2929_vm14 = vmpackc.low %vm2887_vm10, %vm2887_vm10 }
  0x49   : > { %2230 = vrot.lane.b32.xlu0 %v2229_v22, %s2543_s12  ;;  %2235 = vrot.lane.b32.xlu1 %v2234_v25, %s2543_s12  ;;  %vm2937_vm15 = vmpackc.low %vm2897_vm11, %vm2897_vm11 }
  0x4a   : > { %vm2954_vm1 = vmpackc.low %vm2911_vm12, %vm2911_vm12 }
  0x4b   : > { %vm2964_vm2 = vmpackc.low %vm2917_vm13, %vm2917_vm13 }
  0x4d   : > { %2240 = vrot.lane.b32.xlu0 %v2204_v10, %s2544_s20  ;;  %2245 = vrot.lane.b32.xlu1 %v2244_v30, %s2544_s20 }
  0x51   : > { %2250 = vrot.lane.b32.xlu0 %v2249_v33, %s2544_s20  ;;  %2255 = vrot.lane.b32.xlu1 %v2254_v34, %s2544_s20 }
  0x55   : > { %2260 = vrot.lane.b32.xlu0 %v2224_v17, %s2544_s20  ;;  %2265 = vrot.lane.b32.xlu1 %v2264_v35, %s2544_s20 }
  0x59   : > { %2270 = vrot.lane.b32.xlu0 %v2269_v36, %s2544_s20  ;;  %2275 = vrot.lane.b32.xlu1 %v2274_v38, %s2544_s20 }
  0x5d   : > { %593 = vperm.xlu1 %2280, %v583_v39   ;;  %588 = vperm.xlu0 %2279, %v582_v40  }
  0x61   : > { %598 = vperm.xlu1 %2280, %v584_v42   ;;  %603 = vperm.xlu0 %2279, %v585_v43  }
  0xaf   : > { %v2201_v50 = vpop.permute.xlu0 %2200  ;;  %v2211_v52 = vpop.permute.xlu1 %2210 }
  0xb0   : > { %v2202_v54 = vunpack.i.l.bf16 %v2201_v50  ;;  %v2212_v55 = vunpack.i.l.bf16 %v2211_v52  ;;  %v2203_v57 = vunpack.i.h.bf16 %v2201_v50  ;;  %v2213_v58 = vunpack.i.h.bf16 %v2211_v52 }
  0xb2   : > { %v431_v10 = vsel %vm428_vm0, %v2212_v55, %v2202_v54  ;;  %v458_v22 = vsel %vm428_vm0, %v2203_v57, %v2213_v58 }
  0xb3   : > { %v2206_v59 = vpop.permute.xlu0 %2205  ;;  %v2216_v60 = vpop.permute.xlu1 %2215 }
  0xb4   : > { %v2208_v61 = vunpack.i.h.bf16 %v2206_v59  ;;  %v2207_v62 = vunpack.i.l.bf16 %v2206_v59  ;;  %v2218_v63 = vunpack.i.h.bf16 %v2216_v60  ;;  %v2217_v3 = vunpack.i.l.bf16 %v2216_v60 }
  0xb6   : > { %v429_v11 = vsel %vm428_vm0, %v2207_v62, %v2208_v61  ;;  %v457_v17 = vsel %vm428_vm0, %v2202_v54, %v2207_v62  ;;  %v430_v25 = vsel %vm428_vm0, %v2208_v61, %v2212_v55  ;;  %v432_v33 = vsel %vm428_vm0, %v2213_v58, %v2217_v3 }
  0xb7   : > { %v2221_v30 = vpop.permute.xlu0 %2220  ;;  %v434_v34 = vsel %vm428_vm0, %v2218_v63, %v2203_v57  ;;  %v1957_v35 = vpack.c.bf16 %v458_v22, %v457_v17  ;;  %v433_v38 = vsel %vm428_vm0, %v2217_v3, %v2218_v63  ;;  %v2226_v39 = vpop.permute.xlu1 %2225  ;;  %v1954_v40 = vpack.c.bf16 %v432_v33, %v429_v11 }
  0xb8   : > { %v1986_v41 = vpack.c.bf16 %v434_v34, %v431_v10  ;;  %v2228_v43 = vunpack.i.h.bf16 %v2226_v39  ;;  %v2227_v44 = vunpack.i.l.bf16 %v2226_v39  ;;  %v1989_v50 = vpack.c.bf16 %v433_v38, %v430_v25 }
  0xb9   : > { %v2222_v52 = vunpack.i.l.bf16 %v2221_v30  ;;  %1956 = vmatprep.subr.msk.bf16.mxu0 %vm2829_vm4, %v1954_v40  ;;  %v2223_v55 = vunpack.i.h.bf16 %v2221_v30 }
  0xba   : > { %1988 = vmatprep.subr.msk.bf16.mxu1 %vm2837_vm6, %v1986_v41  ;;  %1959 = vmatpush1.bf16.msk.msra.mxu0 %vm2846_vm7, %v1957_v35  ;;  %v435_v60 = vsel %vm428_vm0, %v2227_v44, %v2228_v43 }
  0xbb   : > { %1991 = vmatpush1.bf16.msk.msra.mxu1 %vm2851_vm8, %v1989_v50  ;;  %v2231_v54 = vpop.permute.xlu0 %2230  ;;  %v2236_v57 = vpop.permute.xlu1 %2235  ;;  %v459_v63 = vsel %vm428_vm0, %v2222_v52, %v2227_v44 }
  0xbc   : > { %v2233_v58 = vunpack.i.h.bf16 %v2231_v54  ;;  %v2232_v59 = vunpack.i.l.bf16 %v2231_v54  ;;  %v2238_v61 = vunpack.i.h.bf16 %v2236_v57  ;;  %v2237_v62 = vunpack.i.l.bf16 %v2236_v57 }
  0xbe   : > { %v436_v3 = vsel %vm428_vm0, %v2228_v43, %v2232_v59  ;;  %v437_v10 = vsel %vm428_vm0, %v2232_v59, %v2222_v52  ;;  %v460_v11 = vsel %vm428_vm0, %v2223_v55, %v2233_v58  ;;  %v439_v17 = vsel %vm428_vm0, %v2237_v62, %v2238_v61 }
  0xbf   : > { %v440_v22 = vsel %vm428_vm0, %v2238_v61, %v2223_v55  ;;  %v438_v25 = vsel %vm428_vm0, %v2233_v58, %v2237_v62  ;;  %v1963_v30 = vpack.c.bf16 %v460_v11, %v459_v63  ;;  %v2241_v33 = vpop.permute.xlu0 %2240  ;;  %v1995_v38 = vpack.c.bf16 %v439_v17, %v436_v3  ;;  %v2246_v39 = vpop.permute.xlu1 %2245 }
  0xc0   : > { %v1960_v34 = vpack.c.bf16 %v438_v25, %v435_v60  ;;  %v1992_v35 = vpack.c.bf16 %v440_v22, %v437_v10  ;;  %v2247_v41 = vunpack.i.l.bf16 %v2246_v39  ;;  %v2243_v43 = vunpack.i.h.bf16 %v2241_v33 }
  0xc1   : > { %v2248_v54 = vunpack.i.h.bf16 %v2246_v39  ;;  %v2242_v55 = vunpack.i.l.bf16 %v2241_v33  ;;  %v578_v33 = vld [vmem:[%s3487_s1] sm:$0xff] }
  0xc2   : > { %1962 = vmatprep.subr.msk.bf16.mxu0 %vm2829_vm4, %v1960_v34  ;;  %1994 = vmatprep.subr.msk.bf16.mxu1 %vm2837_vm6, %v1992_v35  ;;  %v519_v0 = vsel %vm517_vm9, %v2243_v43, %v2247_v41  ;;  %v579_v34 = vld [vmem:[%s3487_s1 + $0x8] sm:$0xff]  ;;  %v580_v35 = vld [vmem:[%s3487_s1 + $0x10] sm:$0xff] }
  0xc3   : > { %1965 = vmatpush1.bf16.msk.msra.mxu0 %vm2846_vm7, %v1963_v30  ;;  %v2251_v40 = vpop.permute.xlu0 %2250  ;;  %1997 = vmatpush1.bf16.msk.msra.mxu1 %vm2851_vm8, %v1995_v38  ;;  %v2256_v44 = vpop.permute.xlu1 %2255  ;;  %v550_v2 = vsel %vm517_vm9, %v2248_v54, %v2242_v55  ;;  %v518_v12 = vsel %vm517_vm9, %v2242_v55, %v2243_v43  ;;  %v520_v47 = vsel %vm517_vm9, %v2247_v41, %v2248_v54  ;;  %v581_v38 = vld [vmem:[%s3487_s1 + $0x18] sm:$0xff] }
  0xc4   : > { %v2253_v50 = vunpack.i.h.bf16 %v2251_v40  ;;  %v2252_v52 = vunpack.i.l.bf16 %v2251_v40  ;;  %1967 = vmatprep.subr.bf16.mxu0 %v1966_v23  ;;  %v2258_v57 = vunpack.i.h.bf16 %v2256_v44  ;;  %v2257_v58 = vunpack.i.l.bf16 %v2256_v44  ;;  %1999 = vmatprep.subr.bf16.mxu1 %v1998_v24 }
  0xc6   : > { %v522_v60 = vsel %vm517_vm9, %v2253_v50, %v2257_v58  ;;  %v551_v1 = vsel %vm517_vm9, %v2258_v57, %v2252_v52  ;;  %v521_v6 = vsel %vm517_vm9, %v2252_v52, %v2253_v50  ;;  %v523_v20 = vsel %vm517_vm9, %v2257_v58, %v2258_v57 }
  0xc7   : > { %1969 = vmatpush1.bf16.msra.mxu0 %v1968_v26  ;;  %v2261_v5 = vpop.permute.xlu0 %2260  ;;  %2001 = vmatpush1.bf16.msra.mxu1 %v2000_v27  ;;  %v2266_v23 = vpop.permute.xlu1 %2265  ;;  %v1974_v27 = vpack.c.bf16 %v522_v60, %v519_v0  ;;  %v2006_v13 = vpack.c.bf16 %v551_v1, %v550_v2  ;;  %v1977_v48 = vpack.c.bf16 %v521_v6, %v518_v12 }
  0xc8   : > { %1971 = vmatprep.subr.bf16.mxu0 %v1970_v28  ;;  %v2268_v24 = vunpack.i.h.bf16 %v2266_v23  ;;  %v2267_v26 = vunpack.i.l.bf16 %v2266_v23  ;;  %2003 = vmatprep.subr.bf16.mxu1 %v2002_v29  ;;  %v2263_v28 = vunpack.i.h.bf16 %v2261_v5  ;;  %v2262_v45 = vunpack.i.l.bf16 %v2261_v5 }
  0xc9   : > { %v2009_v19 = vpack.c.bf16 %v523_v20, %v520_v47 }
  0xca   : > { %v525_v21 = vsel %vm517_vm9, %v2263_v28, %v2267_v26  ;;  %v552_v62 = vsel %vm517_vm9, %v2268_v24, %v2262_v45 }
  0xcb   : > { %1973 = vmatpush1.bf16.msra.mxu0 %v1972_v31  ;;  %v2271_v29 = vpop.permute.xlu0 %2270  ;;  %2005 = vmatpush1.bf16.msra.mxu1 %v2004_v32  ;;  %v2276_v49 = vpop.permute.xlu1 %2275  ;;  %v526_v31 = vsel %vm517_vm9, %v2267_v26, %v2268_v24  ;;  %v524_v32 = vsel %vm517_vm9, %v2262_v45, %v2263_v28 }
  0xcc   : > { %v2273_v51 = vunpack.i.h.bf16 %v2271_v29  ;;  %v2272_v53 = vunpack.i.l.bf16 %v2271_v29  ;;  %1976 = vmatprep.subr.msk.bf16.mxu0 %vm2929_vm14, %v1974_v27  ;;  %v2278_v56 = vunpack.i.h.bf16 %v2276_v49  ;;  %v2277_v61 = vunpack.i.l.bf16 %v2276_v49  ;;  %2008 = vmatprep.subr.msk.bf16.mxu1 %vm2937_vm15, %v2006_v13 }
  0xce   : > { %v527_v63 = vsel %vm517_vm9, %v2272_v53, %v2273_v51  ;;  %v529_v3 = vsel %vm517_vm9, %v2277_v61, %v2278_v56  ;;  %v528_v10 = vsel %vm517_vm9, %v2273_v51, %v2277_v61  ;;  %v553_v11 = vsel %vm517_vm9, %v2278_v56, %v2272_v53 }
  0xcf   : > { %v1983_v17 = vpack.c.bf16 %v527_v63, %v524_v32  ;;  %1979 = vmatpush1.bf16.msk.msra.mxu0 %vm2954_vm1, %v1977_v48  ;;  %v2015_v22 = vpack.c.bf16 %v529_v3, %v526_v31  ;;  %v1980_v25 = vpack.c.bf16 %v528_v10, %v525_v21  ;;  %v2012_v30 = vpack.c.bf16 %v553_v11, %v552_v62 }
  0xd0   : > { %2011 = vmatpush1.bf16.msk.msra.mxu1 %vm2964_vm2, %v2009_v19 }
  0xd1   : > { %1982 = vmatprep.subr.msk.bf16.mxu0 %vm2929_vm14, %v1980_v25  ;;  %2014 = vmatprep.subr.msk.bf16.mxu1 %vm2937_vm15, %v2012_v30 }
  0xd3   : > { %1985 = vmatpush1.bf16.msk.msra.mxu0 %vm2954_vm1, %v1983_v17 }
  0xd4   : > { %2017 = vmatpush1.bf16.msk.msra.mxu1 %vm2964_vm2, %v2015_v22 }
  0xd6   : > { %1761 = vmatmul.mubr.msk.f32.vlgmr.msra.gmra.mrb[0].mxu0 %vm606_vm3, %v578_v33 }
  0xd7   : > { %1797 = vmatmul.mubr.msk.f32.vlgmr.msra.gmra.mrb[0].mxu1 %vm606_vm3, %v578_v33  ;;  %689 = vmatprep.mubr.f32.mxu0 %v2545_v37 }
  0xd8   : > { %778 = vmatprep.mubr.f32.mxu1 %v2545_v37 }
  0xda   : > { %1762 = vmatmul.mubr.msk.f32.gmra.mrb[2].mxu0 %vm606_vm3, %v579_v34 }
  0xdb   : > { %1798 = vmatmul.mubr.msk.f32.gmra.mrb[2].mxu1 %vm606_vm3, %v579_v34  ;;  %695 = vmatprep.mubr.f32.mxu0 %v2545_v37 }
  0xdc   : > { %784 = vmatprep.mubr.f32.mxu1 %v2545_v37  ;;  %v589_v39 = vpop.permute.xlu0 %588  ;;  %v594_v55 = vpop.permute.xlu1 %593 }
  0xde   : > { %1763 = vmatmul.mubr.msk.f32.gmra.mrb[4].mxu0 %vm606_vm3, %v580_v35 }
  0xdf   : > { %1799 = vmatmul.mubr.msk.f32.gmra.mrb[4].mxu1 %vm606_vm3, %v580_v35  ;;  %701 = vmatprep.mubr.f32.mxu0 %v2545_v37 }
  0xe0   : > { %790 = vmatprep.mubr.f32.mxu1 %v2545_v37  ;;  %v599_v13 = vpop.permute.xlu1 %598  ;;  %v604_v63 = vpop.permute.xlu0 %603 }
  0xe2   : > { %1764 = vmatmul.mubr.msk.f32.gmra.mrb[6].mxu0 %vm606_vm3, %v581_v38 }
  0xe3   : > { %1800 = vmatmul.mubr.msk.f32.gmra.mrb[6].mxu1 %vm606_vm3, %v581_v38  ;;  %1133 = vmatprep.mubr.f32.mxu0 %v2545_v37 }
  0xe4   : > { %1222 = vmatprep.mubr.f32.mxu1 %v2545_v37 }
 0x1a9   : > { %v685_v40 = vpop.f32.mrb[0].mxu0 }
 0x1aa   : > { %v686_v41 = vadd.f32 %v685_v40, %v589_v39  ;;  %v774_v43 = vpop.f32.mrb[0].mxu1  ;;  %v687_v44 = vpop.f32.mrb[1].mxu0 }
 0x1ab   : > { %v775_v50 = vadd.f32 %v774_v43, %v589_v39  ;;  %v688_v52 = vadd.f32 %v687_v44, %v589_v39  ;;  %v776_v54 = vpop.f32.mrb[1].mxu1 }
 0x1ac   : > { %vm797_vm5 = vcmp.gt.f32.partialorder %v686_v41, 0.0  ;;  %v813_v57 = vmul.f32 0.1, %v686_v41  ;;  %v777_v58 = vadd.f32 %v776_v54, %v589_v39 }
 0x1ad   : > { %vm799_vm10 = vcmp.gt.f32.partialorder %v775_v50, 0.0  ;;  %v815_v59 = vmul.f32 0.1, %v775_v50  ;;  %vm798_vm11 = vcmp.gt.f32.partialorder %v688_v52, 0.0  ;;  %v814_v60 = vmul.f32 0.1, %v688_v52 }
 0x1ae   : > { %v3015_v5 = vsel %vm797_vm5, %v686_v41, %v813_v57  ;;  %vm800_vm12 = vcmp.gt.f32.partialorder %v777_v58, 0.0  ;;  %v816_v9 = vmul.f32 0.1, %v777_v58  ;;  %v691_v0 = vpop.f32.mrb[2].mxu0  ;;  %v780_v1 = vpop.f32.mrb[2].mxu1 }
 0x1af   : > { %v3017_v23 = vsel %vm799_vm10, %v775_v50, %v815_v59  ;;  %v3019_v4 = vsel %vm798_vm11, %v688_v52, %v814_v60  ;;  %v692_v8 = vadd.f32 %v691_v0, %v594_v55  ;;  %v781_v2 = vadd.f32 %v780_v1, %v594_v55  ;;  %v693_v6 = vpop.f32.mrb[3].mxu0  ;;  %v782_v24 = vpop.f32.mrb[3].mxu1 }
 0x1b0   : > { %v3021_v26 = vsel %vm800_vm12, %v777_v58, %v816_v9  ;;  %v694_v20 = vadd.f32 %v693_v6, %v594_v55  ;;  %v783_v27 = vadd.f32 %v782_v24, %v594_v55  ;;  %v3025_v28 = vpack.i.bf16 %v3019_v4, %v3015_v5 }
 0x1b1   : > { %vm801_vm13 = vcmp.gt.f32.partialorder %v692_v8, 0.0  ;;  %v817_v45 = vmul.f32 0.1, %v692_v8  ;;  %vm803_vm5 = vcmp.gt.f32.partialorder %v781_v2, 0.0  ;;  %v819_v12 = vmul.f32 0.1, %v781_v2 }
 0x1b2   : > { %vm802_vm10 = vcmp.gt.f32.partialorder %v694_v20, 0.0  ;;  %v818_v29 = vmul.f32 0.1, %v694_v20  ;;  %vm804_vm11 = vcmp.gt.f32.partialorder %v783_v27, 0.0  ;;  %v820_v47 = vmul.f32 0.1, %v783_v27  ;;  %2282 = vrot.lane.b32.xlu0 %v3025_v28, %s2543_s12 }
 0x1b3   : > { %v3029_v48 = vsel %vm801_vm13, %v692_v8, %v817_v45  ;;  %v3031_v49 = vsel %vm803_vm5, %v781_v2, %v819_v12  ;;  %v697_v51 = vpop.f32.mrb[4].mxu0  ;;  %v786_v53 = vpop.f32.mrb[4].mxu1  ;;  %v2326_v19 = vpack.i.bf16 %v3021_v26, %v3017_v23 }
 0x1b4   : > { %v2032_v31 = vpack.c.bf16 %v3029_v48, %v3015_v5  ;;  %v2064_v56 = vpack.c.bf16 %v3031_v49, %v3017_v23  ;;  %v3039_v61 = vsel %vm802_vm10, %v694_v20, %v818_v29  ;;  %v3041_v21 = vsel %vm804_vm11, %v783_v27, %v820_v47  ;;  %v699_v32 = vpop.f32.mrb[5].mxu0  ;;  %v788_v62 = vpop.f32.mrb[5].mxu1 }
 0x1b5   : > { %v698_v3 = vadd.f32 %v697_v51, %v599_v13  ;;  %v787_v10 = vadd.f32 %v786_v53, %v599_v13  ;;  %v700_v11 = vadd.f32 %v699_v32, %v599_v13  ;;  %v789_v17 = vadd.f32 %v788_v62, %v599_v13  ;;  %v703_v22 = vpop.f32.mrb[6].mxu0 }
 0x1b6   : > { %v704_v25 = vadd.f32 %v703_v22, %v604_v63  ;;  %v792_v30 = vpop.f32.mrb[6].mxu1  ;;  %v2286_v33 = vpack.i.bf16 %v3029_v48, %v3017_v23  ;;  %v705_v34 = vpop.f32.mrb[7].mxu0  ;;  %v2296_v35 = vpack.i.bf16 %v3031_v49, %v3039_v61  ;;  %v2291_v38 = vpack.i.bf16 %v3041_v21, %v3021_v26  ;;  %v1035_v22 = vld [vmem:[%s3490_s4 + $0x10] sm:$0xff] }
 0x1b7   : > { %vm805_vm12 = vcmp.gt.f32.partialorder %v698_v3, 0.0  ;;  %v821_v39 = vmul.f32 0.1, %v698_v3  ;;  %vm807_vm13 = vcmp.gt.f32.partialorder %v787_v10, 0.0  ;;  %v823_v40 = vmul.f32 0.1, %v787_v10 }
 0x1b8   : > { %vm806_vm5 = vcmp.gt.f32.partialorder %v700_v11, 0.0  ;;  %v822_v41 = vmul.f32 0.1, %v700_v11  ;;  %vm808_vm10 = vcmp.gt.f32.partialorder %v789_v17, 0.0  ;;  %v824_v43 = vmul.f32 0.1, %v789_v17  ;;  %2287 = vrot.lane.b32.xlu1 %v2286_v33, %s2543_s12  ;;  %2297 = vrot.lane.b32.xlu0 %v2296_v35, %s2543_s12 }
 0x1b9   : > { %v3051_v44 = vsel %vm805_vm12, %v698_v3, %v821_v39  ;;  %v3053_v50 = vsel %vm807_vm13, %v787_v10, %v823_v40  ;;  %vm809_vm11 = vcmp.gt.f32.partialorder %v704_v25, 0.0  ;;  %v825_v52 = vmul.f32 0.1, %v704_v25  ;;  %v794_v54 = vpop.f32.mrb[7].mxu1 }
 0x1ba   : > { %v3055_v55 = vsel %vm806_vm5, %v700_v11, %v822_v41  ;;  %v3057_v57 = vsel %vm808_vm10, %v789_v17, %v824_v43  ;;  %v793_v58 = vadd.f32 %v792_v30, %v604_v63  ;;  %v706_v59 = vadd.f32 %v705_v34, %v604_v63  ;;  %v1034_v17 = vld [vmem:[%s3490_s4 + $0x8] sm:$0xff] }
 0x1bb   : > { %v3059_v60 = vsel %vm809_vm11, %v704_v25, %v825_v52  ;;  %v795_v9 = vadd.f32 %v794_v54, %v604_v63  ;;  %v2301_v0 = vpack.i.bf16 %v3055_v55, %v3051_v44  ;;  %v2336_v1 = vpack.i.bf16 %v3041_v21, %v3031_v49 }
 0x1bc   : > { %v2036_v8 = vpack.c.bf16 %v3059_v60, %v3051_v44  ;;  %vm811_vm12 = vcmp.gt.f32.partialorder %v793_v58, 0.0  ;;  %v827_v2 = vmul.f32 0.1, %v793_v58  ;;  %vm810_vm13 = vcmp.gt.f32.partialorder %v706_v59, 0.0  ;;  %2292 = vrot.lane.b32.xlu1 %v2291_v38, %s2543_s12 }
 0x1bd   : > { %v826_v6 = vmul.f32 0.1, %v706_v59  ;;  %vm812_vm5 = vcmp.gt.f32.partialorder %v795_v9, 0.0  ;;  %v828_v24 = vmul.f32 0.1, %v795_v9  ;;  %2302 = vrot.lane.b32.xlu0 %v2301_v0, %s2543_s12  ;;  %v2306_v20 = vpack.i.bf16 %v3059_v60, %v3053_v50 }
 0x1be   : > { %v3071_v27 = vsel %vm811_vm12, %v793_v58, %v827_v2  ;;  %v2331_v45 = vpack.i.bf16 %v3039_v61, %v3029_v48  ;;  %v2346_v12 = vpack.i.bf16 %v3057_v57, %v3053_v50  ;;  %v2030_v51 = vpack.c.bf16 %v3039_v61, %v3019_v4 }
 0x1bf   : > { %v2068_v13 = vpack.c.bf16 %v3071_v27, %v3053_v50  ;;  %v3079_v29 = vsel %vm810_vm13, %v706_v59, %v826_v6  ;;  %v3081_v47 = vsel %vm812_vm5, %v795_v9, %v828_v24  ;;  %v2062_v3 = vpack.c.bf16 %v3041_v21, %v3021_v26 }
 0x1c0   : > { %2307 = vrot.lane.b32.xlu1 %v2306_v20, %s2543_s12  ;;  %v2321_v53 = vpack.i.bf16 %v3071_v27, %v3079_v29  ;;  %v2311_v32 = vpack.i.bf16 %v3081_v47, %v3057_v57  ;;  %v2356_v62 = vpack.i.bf16 %v3081_v47, %v3071_v27  ;;  %v2351_v63 = vpack.i.bf16 %v3079_v29, %v3059_v60 }
 0x1c1   : > { %v2034_v10 = vpack.c.bf16 %v3079_v29, %v3055_v55  ;;  %v2066_v11 = vpack.c.bf16 %v3081_v47, %v3057_v57 }
 0x1c2   : > { %2322 = vrot.lane.b32.xlu0 %v2321_v53, %s2543_s12 }
 0x1c4   : > { %2312 = vrot.lane.b32.xlu1 %v2311_v32, %s2543_s12 }
 0x1c6   : > { %2327 = vrot.lane.b32.xlu0 %v2326_v19, %s2544_s20  ;;  %v1036_v19 = vld [vmem:[%s3490_s4 + $0x18] sm:$0xff] }
 0x1c8   : > { %2317 = vrot.lane.b32.xlu1 %v3025_v28, %s2544_s20  ;;  %v1033_v28 = vld [vmem:[%s3490_s4] sm:$0xff] }
 0x1ca   : > { %2337 = vrot.lane.b32.xlu0 %v2336_v1, %s2544_s20 }
 0x1cc   : > { %2332 = vrot.lane.b32.xlu1 %v2331_v45, %s2544_s20 }
 0x1ce   : > { %2347 = vrot.lane.b32.xlu0 %v2346_v12, %s2544_s20 }
 0x1d0   : > { %2342 = vrot.lane.b32.xlu1 %v2301_v0, %s2544_s20 }
 0x1d2   : > { %2357 = vrot.lane.b32.xlu0 %v2356_v62, %s2544_s20 }
 0x1d4   : > { %2352 = vrot.lane.b32.xlu1 %v2351_v63, %s2544_s20 }
 0x1d6   : > { %1044 = vperm.xlu0 %2279, %v1034_v17  }
 0x1d8   : > { %1039 = vperm.xlu1 %2280, %v1033_v28  }
 0x1da   : > { %1054 = vperm.xlu0 %2279, %v1036_v19  }
 0x1dc   : > { %1049 = vperm.xlu1 %2280, %v1035_v22  }
 0x224   : > { %v2283_v25 = vpop.permute.xlu0 %2282 }
 0x225   : > { %v2285_v30 = vunpack.i.h.bf16 %v2283_v25  ;;  %v2284_v33 = vunpack.i.l.bf16 %v2283_v25 }
 0x227   : > { %v897_v43 = vsel %vm428_vm0, %v2284_v33, %v2285_v30 }
 0x22a   : > { %v2288_v34 = vpop.permute.xlu1 %2287  ;;  %v2298_v35 = vpop.permute.xlu0 %2297 }
 0x22b   : > { %v2290_v38 = vunpack.i.h.bf16 %v2288_v34  ;;  %v2299_v39 = vunpack.i.l.bf16 %v2298_v35  ;;  %v2289_v40 = vunpack.i.l.bf16 %v2288_v34  ;;  %v2300_v41 = vunpack.i.h.bf16 %v2298_v35 }
 0x22d   : > { %v900_v52 = vsel %vm428_vm0, %v2290_v38, %v2299_v39  ;;  %v898_v1 = vsel %vm428_vm0, %v2285_v30, %v2289_v40  ;;  %v901_v2 = vsel %vm428_vm0, %v2299_v39, %v2300_v41 }
 0x22e   : > { %v2018_v54 = vpack.c.bf16 %v900_v52, %v897_v43  ;;  %v2293_v58 = vpop.permute.xlu1 %2292  ;;  %v2053_v62 = vpack.c.bf16 %v901_v2, %v898_v1 }
 0x22f   : > { %v2295_v59 = vunpack.i.h.bf16 %v2293_v58  ;;  %v2294_v9 = vunpack.i.l.bf16 %v2293_v58  ;;  %v2303_v0 = vpop.permute.xlu0 %2302 }
 0x230   : > { %2020 = vmatprep.subr.msk.bf16.mxu0 %vm2829_vm4, %v2018_v54  ;;  %v2305_v63 = vunpack.i.h.bf16 %v2303_v0  ;;  %v2304_v17 = vunpack.i.l.bf16 %v2303_v0 }
 0x231   : > { %v899_v6 = vsel %vm428_vm0, %v2289_v40, %v2294_v9  ;;  %v902_v24 = vsel %vm428_vm0, %v2300_v41, %v2295_v59  ;;  %v925_v20 = vsel %vm428_vm0, %v2294_v9, %v2284_v33  ;;  %v926_v45 = vsel %vm428_vm0, %v2295_v59, %v2290_v38 }
 0x232   : > { %v2021_v12 = vpack.c.bf16 %v926_v45, %v925_v20  ;;  %v2050_v53 = vpack.c.bf16 %v902_v24, %v899_v6  ;;  %v2308_v32 = vpop.permute.xlu1 %2307  ;;  %v903_v34 = vsel %vm428_vm0, %v2304_v17, %v2305_v63 }
 0x233   : > { %v2310_v28 = vunpack.i.h.bf16 %v2308_v32  ;;  %v2309_v19 = vunpack.i.l.bf16 %v2308_v32 }
 0x234   : > { %v2323_v22 = vpop.permute.xlu0 %2322  ;;  %2023 = vmatpush1.bf16.msk.msra.mxu0 %vm2846_vm7, %v2021_v12  ;;  %2052 = vmatprep.subr.msk.bf16.mxu1 %vm2837_vm6, %v2050_v53 }
 0x235   : > { %v2325_v25 = vunpack.i.h.bf16 %v2323_v22  ;;  %v2324_v30 = vunpack.i.l.bf16 %v2323_v22  ;;  %2055 = vmatpush1.bf16.msk.msra.mxu1 %vm2851_vm8, %v2053_v62  ;;  %v904_v40 = vsel %vm428_vm0, %v2305_v63, %v2309_v19 }
 0x236   : > { %v2313_v33 = vpop.permute.xlu1 %2312 }
 0x237   : > { %v906_v35 = vsel %vm428_vm0, %v2310_v28, %v2324_v30  ;;  %v2315_v38 = vunpack.i.h.bf16 %v2313_v33  ;;  %v2314_v39 = vunpack.i.l.bf16 %v2313_v33  ;;  %v907_v41 = vsel %vm428_vm0, %v2324_v30, %v2325_v25 }
 0x238   : > { %v2024_v43 = vpack.c.bf16 %v906_v35, %v903_v34  ;;  %v2328_v52 = vpop.permute.xlu0 %2327  ;;  %v2059_v6 = vpack.c.bf16 %v907_v41, %v904_v40 }
 0x239   : > { %v905_v54 = vsel %vm428_vm0, %v2309_v19, %v2314_v39  ;;  %v908_v58 = vsel %vm428_vm0, %v2325_v25, %v2315_v38  ;;  %v927_v59 = vsel %vm428_vm0, %v2314_v39, %v2304_v17  ;;  %v928_v9 = vsel %vm428_vm0, %v2315_v38, %v2310_v28 }
 0x23a   : > { %v2027_v0 = vpack.c.bf16 %v928_v9, %v927_v59  ;;  %v2056_v1 = vpack.c.bf16 %v908_v58, %v905_v54  ;;  %2026 = vmatprep.subr.msk.bf16.mxu0 %vm2829_vm4, %v2024_v43  ;;  %v2318_v2 = vpop.permute.xlu1 %2317  ;;  %v2329_v12 = vunpack.i.l.bf16 %v2328_v52  ;;  %v2330_v26 = vunpack.i.h.bf16 %v2328_v52  ;;  %v1029_v52 = vld [vmem:[%s3489_s3] sm:$0xff]  ;;  %v1030_v54 = vld [vmem:[%s3489_s3 + $0x8] sm:$0xff]  ;;  %v1031_v58 = vld [vmem:[%s3489_s3 + $0x10] sm:$0xff] }
 0x23b   : > { %v2320_v20 = vunpack.i.h.bf16 %v2318_v2  ;;  %v2319_v63 = vunpack.i.l.bf16 %v2318_v2  ;;  %v1032_v59 = vld [vmem:[%s3489_s3 + $0x18] sm:$0xff] }
 0x23c   : > { %v2338_v24 = vpop.permute.xlu0 %2337  ;;  %2029 = vmatpush1.bf16.msk.msra.mxu0 %vm2846_vm7, %v2027_v0  ;;  %2058 = vmatprep.subr.msk.bf16.mxu1 %vm2837_vm6, %v2056_v1  ;;  %v979_v25 = vsel %vm517_vm9, %v2329_v12, %v2330_v26 }
 0x23d   : > { %2031 = vmatprep.subr.bf16.mxu0 %v2030_v51  ;;  %2061 = vmatpush1.bf16.msk.msra.mxu1 %vm2851_vm8, %v2059_v6  ;;  %v2339_v53 = vunpack.i.l.bf16 %v2338_v24  ;;  %v2340_v17 = vunpack.i.h.bf16 %v2338_v24  ;;  %v978_v4 = vsel %vm517_vm9, %v2320_v20, %v2329_v12  ;;  %v977_v48 = vsel %vm517_vm9, %v2319_v63, %v2320_v20 }
 0x23e   : > { %v2333_v45 = vpop.permute.xlu1 %2332  ;;  %2063 = vmatprep.subr.bf16.mxu1 %v2062_v3 }
 0x23f   : > { %v2335_v32 = vunpack.i.h.bf16 %v2333_v45  ;;  %v2334_v62 = vunpack.i.l.bf16 %v2333_v45  ;;  %v982_v19 = vsel %vm517_vm9, %v2339_v53, %v2340_v17 }
 0x240   : > { %v2348_v28 = vpop.permute.xlu0 %2347  ;;  %2033 = vmatpush1.bf16.msra.mxu0 %v2032_v31  ;;  %v1009_v31 = vsel %vm517_vm9, %v2330_v26, %v2319_v63 }
 0x241   : > { %v981_v61 = vsel %vm517_vm9, %v2335_v32, %v2339_v53  ;;  %2035 = vmatprep.subr.bf16.mxu0 %v2034_v10  ;;  %v980_v21 = vsel %vm517_vm9, %v2334_v62, %v2335_v32  ;;  %v1010_v51 = vsel %vm517_vm9, %v2340_v17, %v2334_v62  ;;  %2065 = vmatpush1.bf16.msra.mxu1 %v2064_v56  ;;  %v2350_v56 = vunpack.i.h.bf16 %v2348_v28 }
 0x242   : > { %v2038_v3 = vpack.c.bf16 %v981_v61, %v978_v4  ;;  %v2343_v5 = vpop.permute.xlu1 %2342  ;;  %2067 = vmatprep.subr.bf16.mxu1 %v2066_v11  ;;  %v2041_v23 = vpack.c.bf16 %v980_v21, %v977_v48  ;;  %v2070_v49 = vpack.c.bf16 %v1010_v51, %v1009_v31  ;;  %v2349_v57 = vunpack.i.l.bf16 %v2348_v28 }
 0x243   : > { %v2345_v55 = vunpack.i.h.bf16 %v2343_v5  ;;  %v2344_v29 = vunpack.i.l.bf16 %v2343_v5 }
 0x244   : > { %v2358_v10 = vpop.permute.xlu0 %2357  ;;  %2037 = vmatpush1.bf16.msra.mxu0 %v2036_v8  ;;  %v2073_v8 = vpack.c.bf16 %v982_v19, %v979_v25  ;;  %v985_v41 = vsel %vm517_vm9, %v2349_v57, %v2350_v56 }
 0x245   : > { %2040 = vmatprep.subr.msk.bf16.mxu0 %vm2929_vm14, %v2038_v3  ;;  %v2360_v47 = vunpack.i.h.bf16 %v2358_v10  ;;  %v2359_v11 = vunpack.i.l.bf16 %v2358_v10  ;;  %2069 = vmatpush1.bf16.msra.mxu1 %v2068_v13  ;;  %v983_v30 = vsel %vm517_vm9, %v2344_v29, %v2345_v55  ;;  %v984_v33 = vsel %vm517_vm9, %v2345_v55, %v2349_v57 }
 0x246   : > { %v2353_v22 = vpop.permute.xlu1 %2352  ;;  %2072 = vmatprep.subr.msk.bf16.mxu1 %vm2937_vm15, %v2070_v49  ;;  %v1011_v34 = vsel %vm517_vm9, %v2350_v56, %v2344_v29 }
 0x247   : > { %v2355_v44 = vunpack.i.h.bf16 %v2353_v22  ;;  %v2354_v60 = vunpack.i.l.bf16 %v2353_v22  ;;  %v988_v50 = vsel %vm517_vm9, %v2359_v11, %v2360_v47 }
 0x248   : > { %2043 = vmatpush1.bf16.msk.msra.mxu0 %vm2954_vm1, %v2041_v23  ;;  %v2079_v43 = vpack.c.bf16 %v988_v50, %v985_v41 }
 0x249   : > { %v986_v27 = vsel %vm517_vm9, %v2354_v60, %v2355_v44  ;;  %v987_v13 = vsel %vm517_vm9, %v2355_v44, %v2359_v11  ;;  %v1012_v35 = vsel %vm517_vm9, %v2360_v47, %v2354_v60  ;;  %2075 = vmatpush1.bf16.msk.msra.mxu1 %vm2964_vm2, %v2073_v8 }
 0x24a   : > { %v2044_v38 = vpack.c.bf16 %v987_v13, %v984_v33  ;;  %v2047_v39 = vpack.c.bf16 %v986_v27, %v983_v30  ;;  %v2076_v40 = vpack.c.bf16 %v1012_v35, %v1011_v34 }
 0x24c   : > { %2046 = vmatprep.subr.msk.bf16.mxu0 %vm2929_vm14, %v2044_v38  ;;  %2078 = vmatprep.subr.msk.bf16.mxu1 %vm2937_vm15, %v2076_v40 }
 0x24d   : > { %2049 = vmatpush1.bf16.msk.msra.mxu0 %vm2954_vm1, %v2047_v39  ;;  %2081 = vmatpush1.bf16.msk.msra.mxu1 %vm2964_vm2, %v2079_v43 }
 0x250   : > { %1833 = vmatmul.mubr.msk.f32.vlgmr.msra.gmra.mrb[8].mxu0 %vm606_vm3, %v1029_v52  ;;  %1869 = vmatmul.mubr.msk.f32.vlgmr.msra.gmra.mrb[8].mxu1 %vm606_vm3, %v1029_v52 }
 0x251   : > { %1139 = vmatprep.mubr.f32.mxu0 %v2545_v37  ;;  %1228 = vmatprep.mubr.f32.mxu1 %v2545_v37 }
 0x254   : > { %1834 = vmatmul.mubr.msk.f32.gmra.mrb[10].mxu0 %vm606_vm3, %v1030_v54  ;;  %1870 = vmatmul.mubr.msk.f32.gmra.mrb[10].mxu1 %vm606_vm3, %v1030_v54 }
 0x255   : > { %1145 = vmatprep.mubr.f32.mxu0 %v2545_v37  ;;  %1234 = vmatprep.mubr.f32.mxu1 %v2545_v37  ;;  %v1045_v32 = vpop.permute.xlu0 %1044 }
 0x257   : > { %v1040_v9 = vpop.permute.xlu1 %1039 }
 0x258   : > { %1835 = vmatmul.mubr.msk.f32.gmra.mrb[12].mxu0 %vm606_vm3, %v1031_v58  ;;  %1871 = vmatmul.mubr.msk.f32.gmra.mrb[12].mxu1 %vm606_vm3, %v1031_v58 }
 0x259   : > { %1151 = vmatprep.mubr.f32.mxu0 %v2545_v37  ;;  %1240 = vmatprep.mubr.f32.mxu1 %v2545_v37  ;;  %v1055_v50 = vpop.permute.xlu0 %1054 }
 0x25b   : > { %v1050_v23 = vpop.permute.xlu1 %1049 }
 0x25c   : > { %1836 = vmatmul.mubr.msk.f32.gmra.mrb[14].mxu0 %vm606_vm3, %v1032_v59  ;;  %1872 = vmatmul.mubr.msk.f32.gmra.mrb[14].mxu1 %vm606_vm3, %v1032_v59 }
 0x25d   : > { %1553 = vmatprep.mubr.f32.mxu0 %v2545_v37  ;;  %1624 = vmatprep.mubr.f32.mxu1 %v2545_v37 }
 0x323   : > { %v1135_v0 = vpop.f32.mrb[8].mxu0  ;;  %v1224_v2 = vpop.f32.mrb[8].mxu1 }
 0x324   : > { %v1136_v1 = vadd.f32 %v1135_v0, %v1040_v9  ;;  %v1137_v6 = vpop.f32.mrb[9].mxu0  ;;  %v1225_v24 = vadd.f32 %v1224_v2, %v1040_v9  ;;  %v1226_v45 = vpop.f32.mrb[9].mxu1 }
 0x325   : > { %v1138_v20 = vadd.f32 %v1137_v6, %v1040_v9  ;;  %v1227_v53 = vadd.f32 %v1226_v45, %v1040_v9 }
 0x326   : > { %vm1247_vm10 = vcmp.gt.f32.partialorder %v1136_v1, 0.0  ;;  %v1263_v12 = vmul.f32 0.1, %v1136_v1  ;;  %vm1249_vm11 = vcmp.gt.f32.partialorder %v1225_v24, 0.0  ;;  %v1265_v62 = vmul.f32 0.1, %v1225_v24 }
 0x327   : > { %vm1248_vm12 = vcmp.gt.f32.partialorder %v1138_v20, 0.0  ;;  %v1264_v63 = vmul.f32 0.1, %v1138_v20  ;;  %vm1250_vm13 = vcmp.gt.f32.partialorder %v1227_v53, 0.0  ;;  %v1266_v37 = vmul.f32 0.1, %v1227_v53 }
 0x328   : > { %v3242_v17 = vsel %vm1247_vm10, %v1136_v1, %v1263_v12  ;;  %v1141_v28 = vpop.f32.mrb[10].mxu0  ;;  %v1230_v4 = vpop.f32.mrb[10].mxu1  ;;  %v3244_v61 = vsel %vm1249_vm11, %v1225_v24, %v1265_v62 }
 0x329   : > { %v3246_v26 = vsel %vm1248_vm12, %v1138_v20, %v1264_v63  ;;  %v1142_v21 = vadd.f32 %v1141_v28, %v1045_v32  ;;  %v1231_v51 = vadd.f32 %v1230_v4, %v1045_v32  ;;  %v1143_v3 = vpop.f32.mrb[11].mxu0  ;;  %v1232_v5 = vpop.f32.mrb[11].mxu1  ;;  %v3248_v48 = vsel %vm1250_vm13, %v1227_v53, %v1266_v37 }
 0x32a   : > { %v1144_v31 = vadd.f32 %v1143_v3, %v1045_v32  ;;  %v1233_v55 = vadd.f32 %v1232_v5, %v1045_v32  ;;  %v3252_v29 = vpack.i.bf16 %v3246_v26, %v3242_v17  ;;  %v2406_v25 = vpack.i.bf16 %v3248_v48, %v3244_v61 }
 0x32b   : > { %vm1251_vm5 = vcmp.gt.f32.partialorder %v1142_v21, 0.0  ;;  %v1267_v10 = vmul.f32 0.1, %v1142_v21  ;;  %vm1253_vm10 = vcmp.gt.f32.partialorder %v1231_v51, 0.0  ;;  %v1269_v19 = vmul.f32 0.1, %v1231_v51 }
 0x32c   : > { %vm1252_vm11 = vcmp.gt.f32.partialorder %v1144_v31, 0.0  ;;  %v1268_v49 = vmul.f32 0.1, %v1144_v31  ;;  %vm1254_vm12 = vcmp.gt.f32.partialorder %v1233_v55, 0.0  ;;  %v1270_v56 = vmul.f32 0.1, %v1233_v55  ;;  %2362 = vrot.lane.b32.xlu0 %v3252_v29, %s2543_s12 }
 0x32d   : > { %v3256_v57 = vsel %vm1251_vm5, %v1142_v21, %v1267_v10  ;;  %v3258_v47 = vsel %vm1253_vm10, %v1231_v51, %v1269_v19  ;;  %v1147_v11 = vpop.f32.mrb[12].mxu0  ;;  %v1236_v22 = vpop.f32.mrb[12].mxu1 }
 0x32e   : > { %v2096_v44 = vpack.c.bf16 %v3256_v57, %v3242_v17  ;;  %v2128_v60 = vpack.c.bf16 %v3258_v47, %v3244_v61  ;;  %v3266_v8 = vsel %vm1252_vm11, %v1144_v31, %v1268_v49  ;;  %v3268_v30 = vsel %vm1254_vm12, %v1233_v55, %v1270_v56  ;;  %v1149_v33 = vpop.f32.mrb[13].mxu0  ;;  %v1238_v34 = vpop.f32.mrb[13].mxu1 }
 0x32f   : > { %v1148_v27 = vadd.f32 %v1147_v11, %v1050_v23  ;;  %v1237_v13 = vadd.f32 %v1236_v22, %v1050_v23  ;;  %v1150_v35 = vadd.f32 %v1149_v33, %v1050_v23  ;;  %v1239_v38 = vadd.f32 %v1238_v34, %v1050_v23  ;;  %v1153_v39 = vpop.f32.mrb[14].mxu0  ;;  %v1242_v41 = vpop.f32.mrb[14].mxu1 }
 0x330   : > { %v1154_v40 = vadd.f32 %v1153_v39, %v1055_v50  ;;  %v2366_v43 = vpack.i.bf16 %v3256_v57, %v3244_v61  ;;  %v1155_v52 = vpop.f32.mrb[15].mxu0  ;;  %v2376_v54 = vpack.i.bf16 %v3258_v47, %v3266_v8  ;;  %v2371_v58 = vpack.i.bf16 %v3268_v30, %v3248_v48  ;;  %v1244_v20 = vpop.f32.mrb[15].mxu1 }
 0x331   : > { %vm1255_vm13 = vcmp.gt.f32.partialorder %v1148_v27, 0.0  ;;  %v1271_v59 = vmul.f32 0.1, %v1148_v27  ;;  %vm1257_vm5 = vcmp.gt.f32.partialorder %v1237_v13, 0.0  ;;  %v1273_v9 = vmul.f32 0.1, %v1237_v13 }
 0x332   : > { %vm1256_vm10 = vcmp.gt.f32.partialorder %v1150_v35, 0.0  ;;  %v1272_v0 = vmul.f32 0.1, %v1150_v35  ;;  %vm1258_vm11 = vcmp.gt.f32.partialorder %v1239_v38, 0.0  ;;  %v1274_v1 = vmul.f32 0.1, %v1239_v38  ;;  %2367 = vrot.lane.b32.xlu1 %v2366_v43, %s2543_s12  ;;  %2377 = vrot.lane.b32.xlu0 %v2376_v54, %s2543_s12 }
 0x333   : > { %v3278_v2 = vsel %vm1255_vm13, %v1148_v27, %v1271_v59  ;;  %v3280_v6 = vsel %vm1257_vm5, %v1237_v13, %v1273_v9  ;;  %vm1259_vm12 = vcmp.gt.f32.partialorder %v1154_v40, 0.0  ;;  %v1275_v24 = vmul.f32 0.1, %v1154_v40 }
 0x334   : > { %v3282_v45 = vsel %vm1256_vm10, %v1150_v35, %v1272_v0  ;;  %v3284_v12 = vsel %vm1258_vm11, %v1239_v38, %v1274_v1  ;;  %v1243_v53 = vadd.f32 %v1242_v41, %v1055_v50  ;;  %v1156_v32 = vadd.f32 %v1155_v52, %v1055_v50  ;;  %v1480_v35 = vld [vmem:[%s3492_s6] sm:$0xff] }
 0x335   : > { %v3286_v62 = vsel %vm1259_vm12, %v1154_v40, %v1275_v24  ;;  %v1245_v63 = vadd.f32 %v1244_v20, %v1055_v50  ;;  %v2381_v37 = vpack.i.bf16 %v3282_v45, %v3278_v2  ;;  %v2416_v28 = vpack.i.bf16 %v3268_v30, %v3258_v47 }
 0x336   : > { %v2100_v4 = vpack.c.bf16 %v3286_v62, %v3278_v2  ;;  %vm1261_vm13 = vcmp.gt.f32.partialorder %v1243_v53, 0.0  ;;  %v1277_v21 = vmul.f32 0.1, %v1243_v53  ;;  %vm1260_vm5 = vcmp.gt.f32.partialorder %v1156_v32, 0.0  ;;  %2372 = vrot.lane.b32.xlu1 %v2371_v58, %s2543_s12 }
 0x337   : > { %v1276_v51 = vmul.f32 0.1, %v1156_v32  ;;  %vm1262_vm10 = vcmp.gt.f32.partialorder %v1245_v63, 0.0  ;;  %v1278_v3 = vmul.f32 0.1, %v1245_v63  ;;  %2382 = vrot.lane.b32.xlu0 %v2381_v37, %s2543_s12  ;;  %v2386_v5 = vpack.i.bf16 %v3286_v62, %v3280_v6 }
 0x338   : > { %v3298_v31 = vsel %vm1261_vm13, %v1243_v53, %v1277_v21  ;;  %v2411_v55 = vpack.i.bf16 %v3266_v8, %v3256_v57  ;;  %v2426_v10 = vpack.i.bf16 %v3284_v12, %v3280_v6  ;;  %v2094_v56 = vpack.c.bf16 %v3266_v8, %v3246_v26 }
 0x339   : > { %v2132_v19 = vpack.c.bf16 %v3298_v31, %v3280_v6  ;;  %v3306_v23 = vsel %vm1260_vm5, %v1156_v32, %v1276_v51  ;;  %v3308_v49 = vsel %vm1262_vm10, %v1245_v63, %v1278_v3  ;;  %v2126_v50 = vpack.c.bf16 %v3268_v30, %v3248_v48 }
 0x33a   : > { %2387 = vrot.lane.b32.xlu1 %v2386_v5, %s2543_s12  ;;  %v2401_v11 = vpack.i.bf16 %v3298_v31, %v3306_v23  ;;  %v2391_v22 = vpack.i.bf16 %v3308_v49, %v3284_v12  ;;  %v2436_v33 = vpack.i.bf16 %v3308_v49, %v3298_v31  ;;  %v2431_v34 = vpack.i.bf16 %v3306_v23, %v3286_v62 }
 0x33b   : > { %v2098_v27 = vpack.c.bf16 %v3306_v23, %v3282_v45  ;;  %v2130_v13 = vpack.c.bf16 %v3308_v49, %v3284_v12 }
 0x33c   : > { %2402 = vrot.lane.b32.xlu0 %v2401_v11, %s2543_s12 }
 0x33e   : > { %2392 = vrot.lane.b32.xlu1 %v2391_v22, %s2543_s12  ;;  %s2475_s12 = sshll.u32 %s2547_s15, 4  ;;  %s2476_s12 = int_to_ptr.vmem [resolvable:$false] %s2475_s12 }
 0x33f   : > { %s2477_s19 = scalar_lea.vmem %s2476_s12, 1024  ;;  %p2478_p4 = scmp.lt.s32.totalorder %s3444_s9, %s2476_s12 }
 0x340   : > { %2407 = vrot.lane.b32.xlu0 %v2406_v25, %s2544_s20  ;;  %p2479_p10 = scmp.lt.s32.totalorder %s2477_s19, %s2471_s18 }
 0x342   : > { %2397 = vrot.lane.b32.xlu1 %v3252_v29, %s2544_s20  ;;  %p2480_p1 = por %p2479_p10, %p2478_p4 }
 0x344   : > { %2417 = vrot.lane.b32.xlu0 %v2416_v28, %s2544_s20  ;;  %p2481_p3 = pnand %p2480_p1, %p2474_p13 }
 0x346   : > { %2412 = vrot.lane.b32.xlu1 %v2411_v55, %s2544_s20 }
 0x348   : > { %2427 = vrot.lane.b32.xlu0 %v2426_v10, %s2544_s20 }
 0x34a   : > { %2422 = vrot.lane.b32.xlu1 %v2381_v37, %s2544_s20 }
 0x34c   : > { %2437 = vrot.lane.b32.xlu0 %v2436_v33, %s2544_s20 }
 0x34e   : > { %2432 = vrot.lane.b32.xlu1 %v2431_v34, %s2544_s20 }
 0x352   : > { %1483 = vperm.xlu1 %2280, %v1480_v35  }
 0x39e   : > { %v2363_v25 = vpop.permute.xlu0 %2362 }
 0x39f   : > { %v2365_v38 = vunpack.i.h.bf16 %v2363_v25  ;;  %v2364_v29 = vunpack.i.l.bf16 %v2363_v25 }
 0x3a1   : > { %v1347_v58 = vsel %vm428_vm0, %v2364_v29, %v2365_v38 }
 0x3a4   : > { %v2368_v39 = vpop.permute.xlu1 %2367  ;;  %v2378_v40 = vpop.permute.xlu0 %2377 }
 0x3a5   : > { %v2370_v41 = vunpack.i.h.bf16 %v2368_v39  ;;  %v2379_v43 = vunpack.i.l.bf16 %v2378_v40  ;;  %v2369_v52 = vunpack.i.l.bf16 %v2368_v39  ;;  %v2380_v54 = vunpack.i.h.bf16 %v2378_v40 }
 0x3a7   : > { %v1350_v59 = vsel %vm428_vm0, %v2370_v41, %v2379_v43  ;;  %v1348_v53 = vsel %vm428_vm0, %v2365_v38, %v2369_v52  ;;  %v1351_v32 = vsel %vm428_vm0, %v2379_v43, %v2380_v54 }
 0x3a8   : > { %v2082_v9 = vpack.c.bf16 %v1350_v59, %v1347_v58  ;;  %v2373_v0 = vpop.permute.xlu1 %2372  ;;  %v2117_v55 = vpack.c.bf16 %v1351_v32, %v1348_v53 }
 0x3a9   : > { %v2375_v1 = vunpack.i.h.bf16 %v2373_v0  ;;  %v2374_v24 = vunpack.i.l.bf16 %v2373_v0  ;;  %v2383_v20 = vpop.permute.xlu0 %2382 }
 0x3aa   : > { %2084 = vmatprep.subr.msk.bf16.mxu0 %vm2829_vm4, %v2082_v9  ;;  %v2385_v10 = vunpack.i.h.bf16 %v2383_v20  ;;  %v2384_v11 = vunpack.i.l.bf16 %v2383_v20 }
 0x3ab   : > { %v1349_v63 = vsel %vm428_vm0, %v2369_v52, %v2374_v24  ;;  %v1352_v37 = vsel %vm428_vm0, %v2380_v54, %v2375_v1  ;;  %v1375_v28 = vsel %vm428_vm0, %v2374_v24, %v2364_v29  ;;  %v1376_v21 = vsel %vm428_vm0, %v2375_v1, %v2370_v41 }
 0x3ac   : > { %v2085_v51 = vpack.c.bf16 %v1376_v21, %v1375_v28  ;;  %v2114_v3 = vpack.c.bf16 %v1352_v37, %v1349_v63  ;;  %v2388_v5 = vpop.permute.xlu1 %2387  ;;  %v1353_v29 = vsel %vm428_vm0, %v2384_v11, %v2385_v10 }
 0x3ad   : > { %v2390_v22 = vunpack.i.h.bf16 %v2388_v5  ;;  %v2389_v33 = vunpack.i.l.bf16 %v2388_v5 }
 0x3ae   : > { %v2403_v34 = vpop.permute.xlu0 %2402  ;;  %2087 = vmatpush1.bf16.msk.msra.mxu0 %vm2846_vm7, %v2085_v51  ;;  %2116 = vmatprep.subr.msk.bf16.mxu1 %vm2837_vm6, %v2114_v3 }
 0x3af   : > { %v2405_v35 = vunpack.i.h.bf16 %v2403_v34  ;;  %v2404_v25 = vunpack.i.l.bf16 %v2403_v34  ;;  %2119 = vmatpush1.bf16.msk.msra.mxu1 %vm2851_vm8, %v2117_v55  ;;  %v1354_v43 = vsel %vm428_vm0, %v2385_v10, %v2389_v33 }
 0x3b0   : > { %v2393_v38 = vpop.permute.xlu1 %2392 }
 0x3b1   : > { %v1356_v39 = vsel %vm428_vm0, %v2390_v22, %v2404_v25  ;;  %v2395_v40 = vunpack.i.h.bf16 %v2393_v38  ;;  %v2394_v41 = vunpack.i.l.bf16 %v2393_v38  ;;  %v1357_v52 = vsel %vm428_vm0, %v2404_v25, %v2405_v35 }
 0x3b2   : > { %v2088_v54 = vpack.c.bf16 %v1356_v39, %v1353_v29  ;;  %v2408_v58 = vpop.permute.xlu0 %2407  ;;  %v2123_v32 = vpack.c.bf16 %v1357_v52, %v1354_v43 }
 0x3b3   : > { %v1355_v59 = vsel %vm428_vm0, %v2389_v33, %v2394_v41  ;;  %v1358_v9 = vsel %vm428_vm0, %v2405_v35, %v2395_v40  ;;  %v1377_v0 = vsel %vm428_vm0, %v2394_v41, %v2384_v11  ;;  %v1378_v1 = vsel %vm428_vm0, %v2395_v40, %v2390_v22  ;;  %v1479_v40 = vld [vmem:[%s3491_s5] sm:$0xff] }
 0x3b4   : > { %v2091_v24 = vpack.c.bf16 %v1378_v1, %v1377_v0  ;;  %v2120_v20 = vpack.c.bf16 %v1358_v9, %v1355_v59  ;;  %2090 = vmatprep.subr.msk.bf16.mxu0 %vm2829_vm4, %v2088_v54  ;;  %v2398_v53 = vpop.permute.xlu1 %2397  ;;  %v2409_v7 = vunpack.i.l.bf16 %v2408_v58  ;;  %v2410_v48 = vunpack.i.h.bf16 %v2408_v58 }
 0x3b5   : > { %v2400_v37 = vunpack.i.h.bf16 %v2398_v53  ;;  %v2399_v3 = vunpack.i.l.bf16 %v2398_v53 }
 0x3b6   : > { %v2418_v63 = vpop.permute.xlu0 %2417  ;;  %2093 = vmatpush1.bf16.msk.msra.mxu0 %vm2846_vm7, %v2091_v24  ;;  %2122 = vmatprep.subr.msk.bf16.mxu1 %vm2837_vm6, %v2120_v20  ;;  %v1429_v10 = vsel %vm517_vm9, %v2409_v7, %v2410_v48 }
 0x3b7   : > { %2095 = vmatprep.subr.bf16.mxu0 %v2094_v56  ;;  %2125 = vmatpush1.bf16.msk.msra.mxu1 %vm2851_vm8, %v2123_v32  ;;  %v2419_v21 = vunpack.i.l.bf16 %v2418_v63  ;;  %v2420_v16 = vunpack.i.h.bf16 %v2418_v63  ;;  %v1428_v26 = vsel %vm517_vm9, %v2400_v37, %v2409_v7  ;;  %v1427_v57 = vsel %vm517_vm9, %v2399_v3, %v2400_v37 }
 0x3b8   : > { %v2413_v28 = vpop.permute.xlu1 %2412  ;;  %2127 = vmatprep.subr.bf16.mxu1 %v2126_v50 }
 0x3b9   : > { %v2415_v36 = vunpack.i.h.bf16 %v2413_v28  ;;  %v2414_v51 = vunpack.i.l.bf16 %v2413_v28 }
 0x3ba   : > { %v2428_v5 = vpop.permute.xlu0 %2427  ;;  %2097 = vmatpush1.bf16.msra.mxu0 %v2096_v44  ;;  %v1459_v44 = vsel %vm517_vm9, %v2410_v48, %v2399_v3 }
 0x3bb   : > { %v1431_v42 = vsel %vm517_vm9, %v2415_v36, %v2419_v21  ;;  %2099 = vmatprep.subr.bf16.mxu0 %v2098_v27  ;;  %v1430_v8 = vsel %vm517_vm9, %v2414_v51, %v2415_v36  ;;  %v1460_v30 = vsel %vm517_vm9, %v2420_v16, %v2414_v51  ;;  %2129 = vmatpush1.bf16.msra.mxu1 %v2128_v60  ;;  %v2430_v60 = vunpack.i.h.bf16 %v2428_v5 }
 0x3bc   : > { %v2102_v56 = vpack.c.bf16 %v1431_v42, %v1428_v26  ;;  %v2423_v17 = vpop.permute.xlu1 %2422  ;;  %2131 = vmatprep.subr.bf16.mxu1 %v2130_v13  ;;  %v1432_v27 = vsel %vm517_vm9, %v2419_v21, %v2420_v16  ;;  %v2105_v61 = vpack.c.bf16 %v1430_v8, %v1427_v57  ;;  %v2134_v47 = vpack.c.bf16 %v1460_v30, %v1459_v44 }
 0x3bd   : > { %v2425_v45 = vunpack.i.h.bf16 %v2423_v17  ;;  %v2424_v23 = vunpack.i.l.bf16 %v2423_v17  ;;  %v2429_v12 = vunpack.i.l.bf16 %v2428_v5 }
 0x3be   : > { %v2438_v50 = vpop.permute.xlu0 %2437  ;;  %2101 = vmatpush1.bf16.msra.mxu0 %v2100_v4  ;;  %v2137_v4 = vpack.c.bf16 %v1432_v27, %v1429_v10 }
 0x3bf   : > { %2104 = vmatprep.subr.msk.bf16.mxu0 %vm2929_vm14, %v2102_v56  ;;  %v2440_v49 = vunpack.i.h.bf16 %v2438_v50  ;;  %v2439_v13 = vunpack.i.l.bf16 %v2438_v50  ;;  %2133 = vmatpush1.bf16.msra.mxu1 %v2132_v19  ;;  %v1433_v11 = vsel %vm517_vm9, %v2424_v23, %v2425_v45  ;;  %v1434_v22 = vsel %vm517_vm9, %v2425_v45, %v2429_v12 }
 0x3c0   : > { %v2433_v55 = vpop.permute.xlu1 %2432  ;;  %2136 = vmatprep.subr.msk.bf16.mxu1 %vm2937_vm15, %v2134_v47  ;;  %v1461_v33 = vsel %vm517_vm9, %v2430_v60, %v2424_v23  ;;  %v1435_v29 = vsel %vm517_vm9, %v2429_v12, %v2430_v60 }
 0x3c1   : > { %v2435_v2 = vunpack.i.h.bf16 %v2433_v55  ;;  %v2434_v62 = vunpack.i.l.bf16 %v2433_v55  ;;  %v1438_v6 = vsel %vm517_vm9, %v2439_v13, %v2440_v49 }
 0x3c2   : > { %2107 = vmatpush1.bf16.msk.msra.mxu0 %vm2954_vm1, %v2105_v61  ;;  %v2143_v39 = vpack.c.bf16 %v1438_v6, %v1435_v29 }
 0x3c3   : > { %v1436_v31 = vsel %vm517_vm9, %v2434_v62, %v2435_v2  ;;  %v1437_v19 = vsel %vm517_vm9, %v2435_v2, %v2439_v13  ;;  %v1462_v34 = vsel %vm517_vm9, %v2440_v49, %v2434_v62  ;;  %2139 = vmatpush1.bf16.msk.msra.mxu1 %vm2964_vm2, %v2137_v4 }
 0x3c4   : > { %v2108_v35 = vpack.c.bf16 %v1437_v19, %v1434_v22  ;;  %v2111_v25 = vpack.c.bf16 %v1436_v31, %v1433_v11  ;;  %v2140_v38 = vpack.c.bf16 %v1462_v34, %v1461_v33 }
 0x3c6   : > { %2110 = vmatprep.subr.msk.bf16.mxu0 %vm2929_vm14, %v2108_v35  ;;  %2142 = vmatprep.subr.msk.bf16.mxu1 %vm2937_vm15, %v2140_v38 }
 0x3c7   : > { %2113 = vmatpush1.bf16.msk.msra.mxu0 %vm2954_vm1, %v2111_v25  ;;  %2145 = vmatpush1.bf16.msk.msra.mxu1 %vm2964_vm2, %v2143_v39 }
 0x3ca   : > { %1905 = vmatmul.mubr.msk.f32.vlgmr.msra.gmra.mrb[16].mxu0 %vm606_vm3, %v1479_v40  ;;  %1938 = vmatmul.mubr.msk.f32.vlgmr.msra.gmra.mrb[16].mxu1 %vm606_vm3, %v1479_v40 }
 0x3d1   : > { %v1484_v15 = vpop.permute.xlu1 %1483 }
 0x49d   : > { %v1555_v41 = vpop.f32.mrb[16].mxu0  ;;  %v1626_v14 = vpop.f32.mrb[16].mxu1 }
 0x49e   : > { %v1556_v46 = vadd.f32 %v1555_v41, %v1484_v15  ;;  %v1557_v43 = vpop.f32.mrb[17].mxu0  ;;  %v1627_v52 = vadd.f32 %v1626_v14, %v1484_v15  ;;  %v1628_v58 = vpop.f32.mrb[17].mxu1 }
 0x49f   : > { %v1558_v54 = vadd.f32 %v1557_v43, %v1484_v15  ;;  %v1629_v18 = vadd.f32 %v1628_v58, %v1484_v15 }
 0x4a0   : > { %1631 = vst [vmem:[%s296_s21] sm:$0xff] %v1556_v46  ;;  %1633 = vst [vmem:[%s296_s21 + $0x10] sm:$0xff] %v1627_v52 }
 0x4a1   : > { %1632 = vst [vmem:[%s296_s21 + $0x8] sm:$0xff] %v1558_v54  ;;  %1634 = vst [vmem:[%s296_s21 + $0x18] sm:$0xff] %v1629_v18 }
 0x4a2   : > { %2484 = shalt.err (!%p2481_p3)
}
 0x4a3   : > { %s2485_s17 = scalar_lea.hbm %s3442_s16, 512  ;;  %s2489_s23 = scalar_lea.hbm %s3493_s7, 1024 }
 0x4a4   : > { %p2486_p5 = scmp.ne.s32.totalorder %s3442_s16, %s2485_s17  ;;  %p2490_p9 = scmp.lt.u32.totalorder %s3442_s16, %s3493_s7 }
 0x4a5   : > { %p2491_p0 = scmp.lt.u32.totalorder %s2489_s23, %s2485_s17  ;;  %p2493_p6 = scmp.lt.u32.totalorder %s2485_s17, %s3442_s16 }
 0x4a6   : > { %p2487_p7 = pnand %p2486_p5, %p3525_p11 }
 0x4a7   : > { %p2492_p2 = por %p2491_p0, %p2490_p9 }
 0x4a8   : > { %p2488_p8 = pneg %p2487_p7 }
 0x4a9   : > { %p2494_p12 = por %p2493_p6, %p2492_p2 }
 0x4ab   : > { %p2495_p13 = pnand %p2494_p12, %p2488_p8 }
 0x4ad   : > { %2498 = shalt.err (!%p2495_p13)
}
 0x4ae   : > { %2148 = dma.vmem_to_hbm [thread:$0]  (%p3525_p11), %s3444_s9, 512, %s3442_s16, %s1636_s28  }
 0x4af PF: > { %s1662_s8 = sand.u32 1, %s2525_s24   ;;  %p3526_p4 = scmp.ne.s32.totalorder %s3498_s14, 0 }
 0x4b0   : > { %p3527_p10 = scmp.ge.s32.totalorder %s2537_s27, 2  ;;  %s1663_s11 = scalar_lea.sflag [#allocation4], %s1662_s8 }
 0x4b2   : > { %p2155_p1 = pnand %p3527_p10, %p3526_p4 }
 0x4b4   : > { %2520 = dma.done.wait (!%p2155_p1), %s1663_s11, 512  }
 0x4b5   : > { %2522 = vsyncadd (!%p2155_p1), %s1663_s11, 4294966784  ;;  %p20_p3 = scmp.ge.s32.totalorder %s2613_s30, 4   ;;  %s3528_s24 = smov %s2529_s25 }
 0x4b6   : > { %s3529_s25 = smov %s2533_s26  ;;  %s3530_s26 = smov %s2625_s10 }
 0x4b7   : > { %s3531_s27 = smov %s2613_s30  ;;  %22 = sbr.rel (!%p20_p3) target bundleno = 5 (0x5), region = 93 }
 0x4be   :  { %1668 = vsyncpa [#allocation3], 1 }
 0x4bf   :  { %1670 = vsyncpa [#allocation3 + $0x1], 1 }
 0x4c0   :  { %1671 = vsyncpa [#allocation4], 1 }
 0x4c1   :  { %1673 = vsyncpa [#allocation4 + $0x1], 1 }

</bundles_post_ra>
